<compile_context>
chip_gen: v7x
topology: tpu7x:2x2x1
jax: 0.10.0
libtpu: 0.0.40
codegen_flags: <defaults>
</compile_context>

<pallas_src>
import math
from functools import partial

import jax
import jax.numpy as jnp
from jax.experimental import pallas as pl
from jax.experimental.pallas import tpu as pltpu

# ----------------------------------------------------------------------------
# Model hyper-parameters (small, but consistent with the module's forward).
# ----------------------------------------------------------------------------
MEL_BINS = 128               # fixed by `reshape(-1, 128, T)` in extract_audio_feature
SPEECH_DIM = 128             # config.audio_config.d_model
LLM_HIDDEN = 128             # config.text_config.hidden_size
IMG_SIZE = 32
PATCH = 4                    # -> 8*8 = 64 vision tokens per frame (>= 50 audio tokens)
IMG_CHANNELS = 3
MAX_NUM_FRAMES = 150
AUDIO_TOKENS_PER_FRAME = 50  # fixed by `reshape(..., -1, 50, D)` in the module


def _round_up(x, m):
    return ((x + m - 1) // m) * m


def _rep2(shape):
    # 2-D block identical for every grid step (weights/biases stay VMEM-resident).
    return pl.BlockSpec(shape, lambda i: (0, 0))


def _pick_tf(F, VT, max_rows=2048):
    """Frames per grid step.

    Preference order:
      * TF divides F            -> F_pad == F, post-kernel slice/reshape is free
      * rows = TF*VT <= max_rows, as large as possible -> few grid steps
        (2048 rows keeps double-buffered tiles well under v5e's 16 MiB default
        scoped VMEM; we still set vmem_limit_bytes explicitly for headroom)
      * >= 2 grid steps when cheap -> "parallel" axis splits over v7x's 2 TCs
    """
    max_tf = max(1, min(F, max_rows // VT))
    divisors = [tf for tf in range(1, max_tf + 1) if F % tf == 0]
    best = divisors[-1]
    if F > max_tf and best * 2 < max_tf:
        # Only tiny divisors exist (e.g. prime F): accept output padding instead
        # of a very fine-grained grid.
        return max_tf, _round_up(F, max_tf)
    if F // best < 2:
        # Prefer >= 2 grid steps unless it would shrink the tile by more than 2x.
        for tf in reversed(divisors):
            if F // tf >= 2 and tf * 2 >= best:
                best = tf
                break
    return best, F


# ----------------------------------------------------------------------------
# Shared in-kernel math
# ----------------------------------------------------------------------------
def _mlp2_math(x, gamma, beta, w1, b1, w2, b2):
    """LayerNorm(eps=1e-5) -> Linear -> exact (erf) GELU -> Linear.

    LayerNorm / GELU math always in f32.  Matmul operands are cast to the
    weight dtype (f32 by default, bf16 when use_bf16_matmul) with f32
    accumulation via preferred_element_type.
    """
    mean = jnp.mean(x, axis=-1, keepdims=True)
    xc = x - mean
    var = jnp.mean(xc * xc, axis=-1, keepdims=True)
    xn = xc * jax.lax.rsqrt(var + 1e-5) * gamma + beta
    h = jnp.dot(xn.astype(w1.dtype), w1, preferred_element_type=jnp.float32) + b1
    h = 0.5 * h * (1.0 + jax.lax.erf(h * (1.0 / math.sqrt(2.0))))
    return jnp.dot(h.astype(w2.dtype), w2, preferred_element_type=jnp.float32) + b2


# ----------------------------------------------------------------------------
# Fused kernel: vision patch-embed + speech proj + mlp2 + mixed add
# ----------------------------------------------------------------------------
def _fused_kernel(patch_ref, audio_ref,
                  pw_ref, pb_ref, sw_ref, sb_ref,
                  g_ref, bta_ref, w1_ref, b1_ref, w2_ref, b2_ref,
                  o_ref, *, vit_tokens, audio_tokens):
    rows = o_ref.shape[0]                                  # TF * vit_tokens
    # Vision patch embedding (K = 48 unpadded; Mosaic pads contraction in vregs).
    vit = jnp.dot(patch_ref[...], pw_ref[...],
                  preferred_element_type=jnp.float32) + pb_ref[...]
    # Speech-encoder projection fused with mlp2 (activation never leaves VMEM).
    sp = jnp.dot(audio_ref[...], sw_ref[...],
                 preferred_element_type=jnp.float32) + sb_ref[...]
    au = _mlp2_math(sp, g_ref[...], bta_ref[...],
                    w1_ref[...], b1_ref[...], w2_ref[...], b2_ref[...])
    # create_mixed_embeddings fused in: only the first `audio_tokens` tokens of
    # each frame carry audio; the remaining tokens get the vit embedding only.
    tok = jax.lax.broadcasted_iota(jnp.int32, (rows, 1), 0) % vit_tokens
    au = jnp.where(tok < audio_tokens, au, 0.0)
    o_ref[...] = (vit + au).astype(o_ref.dtype)


def _fused_forward(pixel_values, audio_values, duration, p, use_bf16_matmul=False):
    F, C, H, W = pixel_values.shape
    ph = pw = PATCH
    VT = (H // ph) * (W // pw)
    AT = AUDIO_TOKENS_PER_FRAME
    D = LLM_HIDDEN
    k_in = C * ph * pw

    TF, F_pad = _pick_tf(F, VT)
    rows = TF * VT                              # e.g. 1920 rows/step at 150 frames

    mm_dtype = jnp.bfloat16 if use_bf16_matmul else jnp.float32

    # ---- vision: unfold NCHW frames into patch rows (K stays 48, no padding) ----
    x = pixel_values.reshape(F, C, H // ph, ph, W // pw, pw)
    x = x.transpose(0, 2, 4, 1, 3, 5).reshape(F * VT, k_in)
    if F_pad != F:
        x = jnp.pad(x, ((0, (F_pad - F) * VT), (0, 0)))
    x = x.astype(mm_dtype)

    # ---- audio: mel frames -> token rows, laid out per video frame ----
    T = audio_values.shape[-1]
    toks = audio_values.squeeze(0).reshape(-1, MEL_BINS, T)
    toks = toks.transpose(0, 2, 1).reshape(-1, MEL_BINS)
    need = duration * AT                        # only tokens the mix actually uses
    if toks.shape[0] >= need:
        toks = toks[:need]
    else:
        # TODO(synk): fewer mel tokens than duration*50 — zero rows still pass
        # through speech-proj + mlp2 (the PyTorch module would mis-reshape here).
        toks = jnp.pad(toks, ((0, need - toks.shape[0]), (0, 0)))
    toks = toks.reshape(duration, AT, MEL_BINS)
    # TODO(synk): per-frame 50->64 token pad costs ~28% extra audio bytes/FLOPs;
    # kept because the unpadded layout would need a non-8-aligned in-kernel regroup.
    toks = jnp.pad(toks, ((0, F_pad - duration), (0, VT - AT), (0, 0)))
    audio_rows = toks.reshape(F_pad * VT, MEL_BINS).astype(mm_dtype)

    def wdt(a):                                 # matmul weight dtype (opt-in bf16)
        return a.astype(mm_dtype)

    kernel = partial(_fused_kernel, vit_tokens=VT, audio_tokens=AT)
    mixed2d = pl.pallas_call(
        kernel,
        out_shape=jax.ShapeDtypeStruct((F_pad * VT, D), jnp.float32),
        grid=(F_pad // TF,),
        in_specs=[
            pl.BlockSpec((rows, k_in), lambda i: (i, 0)),      # last dim == full dim
            pl.BlockSpec((rows, MEL_BINS), lambda i: (i, 0)),
            _rep2((k_in, D)),
            _rep2((1, D)),
            _rep2((MEL_BINS, SPEECH_DIM)),
            _rep2((1, SPEECH_DIM)),
            _rep2((1, SPEECH_DIM)),
            _rep2((1, SPEECH_DIM)),
            _rep2((SPEECH_DIM, D)),
            _rep2((1, D)),
            _rep2((D, D)),
            _rep2((1, D)),
        ],
        out_specs=pl.BlockSpec((rows, D), lambda i: (i, 0)),
        compiler_params=pltpu.CompilerParams(
            dimension_semantics=("parallel",),     # shard grid across v7x's 2 TCs
            vmem_limit_bytes=32 * 1024 * 1024),    # headroom over v5e's 16 MiB default
    )(x, audio_rows,
      wdt(p["patch_w"]), p["patch_b"].reshape(1, -1),
      wdt(p["speech_w"]), p["speech_b"].reshape(1, -1),
      p["ln_gamma"].reshape(1, -1), p["ln_beta"].reshape(1, -1),
      wdt(p["mlp2_w1"]), p["mlp2_b1"].reshape(1, -1),
      wdt(p["mlp2_w2"]), p["mlp2_b2"].reshape(1, -1))
    if F_pad != F:                               # only then is a real slice needed
        mixed2d = mixed2d[: F * VT]
    return mixed2d.reshape(F, VT, D)


# ----------------------------------------------------------------------------
# Fallback kernels (rare path: duration > max_num_frames etc.) — tiled over rows
# TODO(synk): rare path still uses three separate pallas_calls; fusing vision
#             matmul + mixed add there (as in _fused_kernel) is a known follow-up.
# ----------------------------------------------------------------------------
def _matmul_bias_kernel(a_ref, w_ref, b_ref, o_ref):
    acc = jnp.dot(a_ref[...], w_ref[...], preferred_element_type=jnp.float32)
    o_ref[...] = (acc + b_ref[...]).astype(o_ref.dtype)


def matmul_bias(a, w, b, *, max_tile=1024):
    M, K = a.shape
    N = w.shape[1]
    tm = min(max_tile, _round_up(M, 8))
    Mp = _round_up(M, tm)
    if Mp != M:
        a = jnp.pad(a, ((0, Mp - M), (0, 0)))
    out = pl.pallas_call(
        _matmul_bias_kernel,
        out_shape=jax.ShapeDtypeStruct((Mp, N), jnp.float32),
        grid=(Mp // tm,),
        in_specs=[pl.BlockSpec((tm, K), lambda i: (i, 0)),
                  _rep2((K, N)),
                  _rep2((1, N))],
        out_specs=pl.BlockSpec((tm, N), lambda i: (i, 0)),
        compiler_params=pltpu.CompilerParams(
            dimension_semantics=("parallel",),
            vmem_limit_bytes=32 * 1024 * 1024),
    )(a, w, b.reshape(1, -1))
    return out[:M]


def _audio_proj_mlp2_kernel(x_ref, sw_ref, sb_ref, g_ref, bta_ref,
                            w1_ref, b1_ref, w2_ref, b2_ref, o_ref):
    sp = jnp.dot(x_ref[...], sw_ref[...],
                 preferred_element_type=jnp.float32) + sb_ref[...]
    o_ref[...] = _mlp2_math(sp, g_ref[...], bta_ref[...], w1_ref[...],
                            b1_ref[...], w2_ref[...], b2_ref[...]).astype(o_ref.dtype)


def audio_proj_mlp2(tokens2d, p, *, max_tile=1024):
    M, K = tokens2d.shape
    D = LLM_HIDDEN
    tm = min(max_tile, _round_up(M, 8))
    Mp = _round_up(M, tm)
    if Mp != M:
        tokens2d = jnp.pad(tokens2d, ((0, Mp - M), (0, 0)))
    out = pl.pallas_call(
        _audio_proj_mlp2_kernel,
        out_shape=jax.ShapeDtypeStruct((Mp, D), jnp.float32),
        grid=(Mp // tm,),
        in_specs=[pl.BlockSpec((tm, K), lambda i: (i, 0)),
                  _rep2((K, SPEECH_DIM)), _rep2((1, SPEECH_DIM)),
                  _rep2((1, SPEECH_DIM)), _rep2((1, SPEECH_DIM)),
                  _rep2((SPEECH_DIM, D)), _rep2((1, D)),
                  _rep2((D, D)), _rep2((1, D))],
        out_specs=pl.BlockSpec((tm, D), lambda i: (i, 0)),
        compiler_params=pltpu.CompilerParams(
            dimension_semantics=("parallel",),
            vmem_limit_bytes=32 * 1024 * 1024),
    )(tokens2d, p["speech_w"], p["speech_b"].reshape(1, -1),
      p["ln_gamma"].reshape(1, -1), p["ln_beta"].reshape(1, -1),
      p["mlp2_w1"], p["mlp2_b1"].reshape(1, -1),
      p["mlp2_w2"], p["mlp2_b2"].reshape(1, -1))
    return out[:M]


def _add_kernel(a_ref, b_ref, o_ref):
    o_ref[...] = a_ref[...] + b_ref[...]


def add_tiled(a, b, *, max_tile=2048):
    shape = a.shape
    D = shape[-1]
    a2 = a.reshape(-1, D)
    b2 = b.reshape(-1, D)
    M = a2.shape[0]
    tm = min(max_tile, _round_up(M, 8))
    Mp = _round_up(M, tm)
    if Mp != M:
        a2 = jnp.pad(a2, ((0, Mp - M), (0, 0)))
        b2 = jnp.pad(b2, ((0, Mp - M), (0, 0)))
    out = pl.pallas_call(
        _add_kernel,
        out_shape=jax.ShapeDtypeStruct((Mp, D), a.dtype),
        grid=(Mp // tm,),
        in_specs=[pl.BlockSpec((tm, D), lambda i: (i, 0)),
                  pl.BlockSpec((tm, D), lambda i: (i, 0))],
        out_specs=pl.BlockSpec((tm, D), lambda i: (i, 0)),
        compiler_params=pltpu.CompilerParams(dimension_semantics=("parallel",)),
    )(a2, b2)
    return out[:M].reshape(shape)


# ----------------------------------------------------------------------------
# Fallback forward pieces (mirror the PyTorch module exactly)
# ----------------------------------------------------------------------------
def vision_model_forward(pixel_values, p):
    F_, C, H, W = pixel_values.shape
    ph = pw = PATCH
    VT = (H // ph) * (W // pw)
    k_in = C * ph * pw
    x = pixel_values.reshape(F_, C, H // ph, ph, W // pw, pw)
    x = x.transpose(0, 2, 4, 1, 3, 5).reshape(F_ * VT, k_in)
    # K = 48 stays unpadded (block last dim == full array dim is legal).
    return matmul_bias(x, p["patch_w"], p["patch_b"]).reshape(F_, VT, LLM_HIDDEN)


def extract_audio_feature(audio_values, p):
    T = audio_values.shape[-1]
    segs = audio_values.squeeze(0).reshape(-1, MEL_BINS, T)
    num_segments = segs.shape[0]
    toks = segs.transpose(0, 2, 1).reshape(-1, MEL_BINS)
    out = audio_proj_mlp2(toks, p)
    return num_segments, out.reshape(1, -1, LLM_HIDDEN)


def create_mixed_embeddings(vit_embeds, audio_embeds, duration,
                            max_num_frames=MAX_NUM_FRAMES):
    D = audio_embeds.shape[-1]
    audio_embeds = audio_embeds.reshape(
        audio_embeds.shape[0], -1, AUDIO_TOKENS_PER_FRAME, D)
    audio_no_pad = audio_embeds[:, :duration][0]
    if duration > max_num_frames:
        per = math.ceil(audio_no_pad.shape[0] / max_num_frames * 50)
        num_sum = per * max_num_frames
        flat = audio_no_pad.reshape(-1, D)
        if num_sum != flat.shape[0]:
            flat = jnp.concatenate(
                [flat, jnp.zeros((num_sum - flat.shape[0], D), flat.dtype)], axis=0)
        audio_no_pad = flat.reshape(max_num_frames, -1, D)
    padding_size = vit_embeds.shape[1] - audio_no_pad.shape[1]
    if padding_size != 0:
        zeros = jnp.zeros((audio_no_pad.shape[0], padding_size, D),
                          audio_no_pad.dtype)
        audio_pad = jnp.concatenate([audio_no_pad, zeros], axis=1)
    else:
        audio_pad = audio_no_pad
    return add_tiled(vit_embeds, audio_pad)


# ----------------------------------------------------------------------------
# Top-level forward
# ----------------------------------------------------------------------------
def video_audio_encoder_forward(pixel_values, audio_values, duration, p,
                                *, use_bf16_matmul=False):
    F = pixel_values.shape[0]
    VT = (pixel_values.shape[2] // PATCH) * (pixel_values.shape[3] // PATCH)
    if (duration <= MAX_NUM_FRAMES and F == duration
            and VT >= AUDIO_TOKENS_PER_FRAME):
        return _fused_forward(pixel_values, audio_values, duration, p,
                              use_bf16_matmul=use_bf16_matmul)
    # TODO(synk): rare path (duration > max_num_frames / frame mismatch) uses
    #             separate tiled kernels instead of the single fused launch.
    vit_embeds = vision_model_forward(pixel_values, p)
    _, audio_embeds = extract_audio_feature(audio_values, p)
    return create_mixed_embeddings(vit_embeds, audio_embeds, duration)


# ----------------------------------------------------------------------------
# Pure-JAX reference (for verification of the Pallas plumbing)
# ----------------------------------------------------------------------------
def _pure_jax_reference(pixel_values, audio_values, duration, p):
    F, C, H, W = pixel_values.shape
    ph = pw = PATCH
    VT = (H // ph) * (W // pw)
    x = pixel_values.reshape(F, C, H // ph, ph, W // pw, pw)
    x = x.transpose(0, 2, 4, 1, 3, 5).reshape(F * VT, C * ph * pw)
    vit = (x @ p["patch_w"] + p["patch_b"]).reshape(F, VT, LLM_HIDDEN)

    T = audio_values.shape[-1]
    toks = audio_values.squeeze(0).reshape(-1, MEL_BINS, T)
    toks = toks.transpose(0, 2, 1).reshape(-1, MEL_BINS)
    sp = toks @ p["speech_w"] + p["speech_b"]
    mean = sp.mean(-1, keepdims=True)
    var = ((sp - mean) ** 2).mean(-1, keepdims=True)
    xn = (sp - mean) * jax.lax.rsqrt(var + 1e-5) * p["ln_gamma"] + p["ln_beta"]
    h = xn @ p["mlp2_w1"] + p["mlp2_b1"]
    h = 0.5 * h * (1.0 + jax.lax.erf(h / math.sqrt(2.0)))
    au = h @ p["mlp2_w2"] + p["mlp2_b2"]
    au = au.reshape(-1, AUDIO_TOKENS_PER_FRAME, LLM_HIDDEN)[:duration]
    au = jnp.pad(au, ((0, 0), (0, VT - AUDIO_TOKENS_PER_FRAME), (0, 0)))
    return vit + au


# ----------------------------------------------------------------------------
# Deterministic parameter init
# ----------------------------------------------------------------------------
def init_params(key):
    ks = jax.random.split(key, 8)
    s = 0.02
    patch_in = IMG_CHANNELS * PATCH * PATCH
    return {
        "patch_w": jax.random.normal(ks[0], (patch_in, LLM_HIDDEN), jnp.float32) * s,
        "patch_b": jax.random.normal(ks[1], (LLM_HIDDEN,), jnp.float32) * s,
        "speech_w": jax.random.normal(ks[2], (MEL_BINS, SPEECH_DIM), jnp.float32) * s,
        "speech_b": jax.random.normal(ks[3], (SPEECH_DIM,), jnp.float32) * s,
        "ln_gamma": jnp.ones((SPEECH_DIM,), jnp.float32),
        "ln_beta": jnp.zeros((SPEECH_DIM,), jnp.float32),
        "mlp2_w1": jax.random.normal(ks[4], (SPEECH_DIM, LLM_HIDDEN), jnp.float32) * s,
        "mlp2_b1": jax.random.normal(ks[5], (LLM_HIDDEN,), jnp.float32) * s,
        "mlp2_w2": jax.random.normal(ks[6], (LLM_HIDDEN, LLM_HIDDEN), jnp.float32) * s,
        "mlp2_b2": jax.random.normal(ks[7], (LLM_HIDDEN,), jnp.float32) * s,
    }


if __name__ == "__main__":
    key = jax.random.PRNGKey(0)
    pkey, xkey, akey = jax.random.split(key, 3)
    params = init_params(pkey)

    duration = 3                               # frames / seconds of video
    num_frames = duration
    mel_T = 200                                # 200 audio mel frames = 4 * 50 tokens

    pixel_values = jax.random.normal(
        xkey, (num_frames, IMG_CHANNELS, IMG_SIZE, IMG_SIZE), jnp.float32)
    audio_values = jax.random.normal(akey, (1, MEL_BINS, mel_T), jnp.float32)

    expected_shape = (num_frames, (IMG_SIZE // PATCH) ** 2, LLM_HIDDEN)
    ref = _pure_jax_reference(pixel_values, audio_values, duration, params)

    # Default path: f32 matmul operands (PyTorch-default numerics).
    fwd = jax.jit(video_audio_encoder_forward, static_argnums=(2,))
    mixed = fwd(pixel_values, audio_values, duration, params)
    jax.block_until_ready(mixed)
    assert mixed.shape == expected_shape, (mixed.shape, expected_shape)
    max_err = float(jnp.max(jnp.abs(mixed - ref)))
    assert bool(jnp.allclose(mixed, ref, atol=2e-2, rtol=2e-2)), max_err

    # Opt-in bf16 matmul operands (f32 accumulation) — main win on v5e's MXU.
    fwd_bf16 = jax.jit(partial(video_audio_encoder_forward, use_bf16_matmul=True),
                       static_argnums=(2,))
    mixed_bf16 = fwd_bf16(pixel_values, audio_values, duration, params)
    jax.block_until_ready(mixed_bf16)
    assert mixed_bf16.shape == expected_shape
    max_err_bf16 = float(jnp.max(jnp.abs(mixed_bf16 - ref)))
    assert bool(jnp.allclose(mixed_bf16, ref, atol=6e-2, rtol=6e-2)), max_err_bf16

    print("KERNEL_OK")
</pallas_src>

<mosaic_0001>
module attributes {stable_mosaic.version = 11 : i64} {
  func.func @_fused_kernel(%arg0: i32, %arg1: memref<192x48xf32, #tpu.memory_space<vmem>>, %arg2: memref<192x128xf32, #tpu.memory_space<vmem>>, %arg3: memref<48x128xf32, #tpu.memory_space<vmem>>, %arg4: memref<1x128xf32, #tpu.memory_space<vmem>>, %arg5: memref<128x128xf32, #tpu.memory_space<vmem>>, %arg6: memref<1x128xf32, #tpu.memory_space<vmem>>, %arg7: memref<1x128xf32, #tpu.memory_space<vmem>>, %arg8: memref<1x128xf32, #tpu.memory_space<vmem>>, %arg9: memref<128x128xf32, #tpu.memory_space<vmem>>, %arg10: memref<1x128xf32, #tpu.memory_space<vmem>>, %arg11: memref<128x128xf32, #tpu.memory_space<vmem>>, %arg12: memref<1x128xf32, #tpu.memory_space<vmem>>, %arg13: memref<192x128xf32, #tpu.memory_space<vmem>>) attributes {dimension_semantics = [#tpu.dimension_semantics<parallel>], iteration_bounds = array<i64: 1>, scalar_prefetch = 0 : i64, scratch_operands = 0 : i64, tpu.core_type = #tpu.core_type<tc>, window_params = [{transform_indices = @transform_0, window_bounds = array<i64: 192, 48>}, {transform_indices = @transform_1, window_bounds = array<i64: 192, 128>}, {pipeline_mode = #tpu.pipeline_mode<synchronous>, transform_indices = @transform_2, window_bounds = array<i64: 48, 128>}, {pipeline_mode = #tpu.pipeline_mode<synchronous>, transform_indices = @transform_3, window_bounds = array<i64: 1, 128>}, {pipeline_mode = #tpu.pipeline_mode<synchronous>, transform_indices = @transform_4, window_bounds = array<i64: 128, 128>}, {pipeline_mode = #tpu.pipeline_mode<synchronous>, transform_indices = @transform_5, window_bounds = array<i64: 1, 128>}, {pipeline_mode = #tpu.pipeline_mode<synchronous>, transform_indices = @transform_6, window_bounds = array<i64: 1, 128>}, {pipeline_mode = #tpu.pipeline_mode<synchronous>, transform_indices = @transform_7, window_bounds = array<i64: 1, 128>}, {pipeline_mode = #tpu.pipeline_mode<synchronous>, transform_indices = @transform_8, window_bounds = array<i64: 128, 128>}, {pipeline_mode = #tpu.pipeline_mode<synchronous>, transform_indices = @transform_9, window_bounds = array<i64: 1, 128>}, {pipeline_mode = #tpu.pipeline_mode<synchronous>, transform_indices = @transform_10, window_bounds = array<i64: 128, 128>}, {pipeline_mode = #tpu.pipeline_mode<synchronous>, transform_indices = @transform_11, window_bounds = array<i64: 1, 128>}, {transform_indices = @transform_12, window_bounds = array<i64: 192, 128>}]} {
    %c0 = arith.constant 0 : index
    %c0_0 = arith.constant 0 : index
    %0 = vector.load %arg1[%c0, %c0_0] : memref<192x48xf32, #tpu.memory_space<vmem>>, vector<192x48xf32>
    %c0_1 = arith.constant 0 : index
    %c0_2 = arith.constant 0 : index
    %1 = vector.load %arg3[%c0_1, %c0_2] : memref<48x128xf32, #tpu.memory_space<vmem>>, vector<48x128xf32>
    %cst = arith.constant dense<0.000000e+00> : vector<192x128xf32>
    %2 = tpu.matmul %0, %1, %cst {dimension_numbers = #tpu.dot_dimension_numbers<[1], [0], [0], [1], [0, 0, 1, 1], [], []>} : vector<192x48xf32>, vector<48x128xf32>, vector<192x128xf32> -> vector<192x128xf32>
    %c0_3 = arith.constant 0 : index
    %c0_4 = arith.constant 0 : index
    %3 = vector.load %arg4[%c0_3, %c0_4] : memref<1x128xf32, #tpu.memory_space<vmem>>, vector<1x128xf32>
    %4 = vector.broadcast %3 : vector<1x128xf32> to vector<192x128xf32>
    %5 = arith.addf %2, %4 : vector<192x128xf32>
    %c0_5 = arith.constant 0 : index
    %c0_6 = arith.constant 0 : index
    %6 = vector.load %arg2[%c0_5, %c0_6] : memref<192x128xf32, #tpu.memory_space<vmem>>, vector<192x128xf32>
    %c0_7 = arith.constant 0 : index
    %c0_8 = arith.constant 0 : index
    %7 = vector.load %arg5[%c0_7, %c0_8] : memref<128x128xf32, #tpu.memory_space<vmem>>, vector<128x128xf32>
    %cst_9 = arith.constant dense<0.000000e+00> : vector<192x128xf32>
    %8 = tpu.matmul %6, %7, %cst_9 {dimension_numbers = #tpu.dot_dimension_numbers<[1], [0], [0], [1], [0, 0, 1, 1], [], []>} : vector<192x128xf32>, vector<128x128xf32>, vector<192x128xf32> -> vector<192x128xf32>
    %c0_10 = arith.constant 0 : index
    %c0_11 = arith.constant 0 : index
    %9 = vector.load %arg6[%c0_10, %c0_11] : memref<1x128xf32, #tpu.memory_space<vmem>>, vector<1x128xf32>
    %10 = vector.broadcast %9 : vector<1x128xf32> to vector<192x128xf32>
    %11 = arith.addf %8, %10 : vector<192x128xf32>
    %c0_12 = arith.constant 0 : index
    %c0_13 = arith.constant 0 : index
    %12 = vector.load %arg7[%c0_12, %c0_13] : memref<1x128xf32, #tpu.memory_space<vmem>>, vector<1x128xf32>
    %c0_14 = arith.constant 0 : index
    %c0_15 = arith.constant 0 : index
    %13 = vector.load %arg8[%c0_14, %c0_15] : memref<1x128xf32, #tpu.memory_space<vmem>>, vector<1x128xf32>
    %c0_16 = arith.constant 0 : index
    %c0_17 = arith.constant 0 : index
    %14 = vector.load %arg9[%c0_16, %c0_17] : memref<128x128xf32, #tpu.memory_space<vmem>>, vector<128x128xf32>
    %c0_18 = arith.constant 0 : index
    %c0_19 = arith.constant 0 : index
    %15 = vector.load %arg10[%c0_18, %c0_19] : memref<1x128xf32, #tpu.memory_space<vmem>>, vector<1x128xf32>
    %c0_20 = arith.constant 0 : index
    %c0_21 = arith.constant 0 : index
    %16 = vector.load %arg11[%c0_20, %c0_21] : memref<128x128xf32, #tpu.memory_space<vmem>>, vector<128x128xf32>
    %c0_22 = arith.constant 0 : index
    %c0_23 = arith.constant 0 : index
    %17 = vector.load %arg12[%c0_22, %c0_23] : memref<1x128xf32, #tpu.memory_space<vmem>>, vector<1x128xf32>
    %cst_24 = arith.constant dense<0.000000e+00> : vector<192xf32>
    %18 = vector.multi_reduction <add>, %11, %cst_24 [1] : vector<192x128xf32> to vector<192xf32>
    %19 = vector.shape_cast %18 : vector<192xf32> to vector<192x1xf32>
    %cst_25 = arith.constant 1.280000e+02 : f32
    %20 = vector.broadcast %cst_25 : f32 to vector<192x1xf32>
    %21 = arith.divf %19, %20 : vector<192x1xf32>
    %22 = vector.broadcast %21 : vector<192x1xf32> to vector<192x128xf32>
    %23 = arith.subf %11, %22 : vector<192x128xf32>
    %24 = arith.mulf %23, %23 : vector<192x128xf32>
    %cst_26 = arith.constant dense<0.000000e+00> : vector<192xf32>
    %25 = vector.multi_reduction <add>, %24, %cst_26 [1] : vector<192x128xf32> to vector<192xf32>
    %26 = vector.shape_cast %25 : vector<192xf32> to vector<192x1xf32>
    %cst_27 = arith.constant 1.280000e+02 : f32
    %27 = vector.broadcast %cst_27 : f32 to vector<192x1xf32>
    %28 = arith.divf %26, %27 : vector<192x1xf32>
    %cst_28 = arith.constant 9.99999974E-6 : f32
    %29 = vector.broadcast %cst_28 : f32 to vector<192x1xf32>
    %30 = arith.addf %28, %29 : vector<192x1xf32>
    %31 = math.rsqrt %30 : vector<192x1xf32>
    %32 = vector.broadcast %31 : vector<192x1xf32> to vector<192x128xf32>
    %33 = arith.mulf %23, %32 : vector<192x128xf32>
    %34 = vector.broadcast %12 : vector<1x128xf32> to vector<192x128xf32>
    %35 = arith.mulf %33, %34 : vector<192x128xf32>
    %36 = vector.broadcast %13 : vector<1x128xf32> to vector<192x128xf32>
    %37 = arith.addf %35, %36 : vector<192x128xf32>
    %cst_29 = arith.constant dense<0.000000e+00> : vector<192x128xf32>
    %38 = tpu.matmul %37, %14, %cst_29 {dimension_numbers = #tpu.dot_dimension_numbers<[1], [0], [0], [1], [0, 0, 1, 1], [], []>} : vector<192x128xf32>, vector<128x128xf32>, vector<192x128xf32> -> vector<192x128xf32>
    %39 = vector.broadcast %15 : vector<1x128xf32> to vector<192x128xf32>
    %40 = arith.addf %38, %39 : vector<192x128xf32>
    %cst_30 = arith.constant 5.000000e-01 : f32
    %41 = vector.broadcast %cst_30 : f32 to vector<192x128xf32>
    %42 = arith.mulf %41, %40 : vector<192x128xf32>
    %cst_31 = arith.constant 0.707106769 : f32
    %43 = vector.broadcast %cst_31 : f32 to vector<192x128xf32>
    %44 = arith.mulf %40, %43 : vector<192x128xf32>
    %45 = math.erf %44 : vector<192x128xf32>
    %cst_32 = arith.constant 1.000000e+00 : f32
    %46 = vector.broadcast %cst_32 : f32 to vector<192x128xf32>
    %47 = arith.addf %46, %45 : vector<192x128xf32>
    %48 = arith.mulf %42, %47 : vector<192x128xf32>
    %cst_33 = arith.constant dense<0.000000e+00> : vector<192x128xf32>
    %49 = tpu.matmul %48, %16, %cst_33 {dimension_numbers = #tpu.dot_dimension_numbers<[1], [0], [0], [1], [0, 0, 1, 1], [], []>} : vector<192x128xf32>, vector<128x128xf32>, vector<192x128xf32> -> vector<192x128xf32>
    %50 = vector.broadcast %17 : vector<1x128xf32> to vector<192x128xf32>
    %51 = arith.addf %49, %50 : vector<192x128xf32>
    %52 = tpu.iota {dimensions = array<i32: 0>} : vector<192x1xi32>
    %c64_i32 = arith.constant 64 : i32
    %c0_i32 = arith.constant 0 : i32
    %53 = arith.cmpi eq, %c64_i32, %c0_i32 : i32
    %c1_i32 = arith.constant 1 : i32
    %54 = arith.select %53, %c1_i32, %c64_i32 : i32
    %55 = vector.broadcast %54 : i32 to vector<192x1xi32>
    %56 = arith.remsi %52, %55 : vector<192x1xi32>
    %c0_i32_34 = arith.constant 0 : i32
    %57 = vector.broadcast %c0_i32_34 : i32 to vector<192x1xi32>
    %58 = arith.cmpi ne, %56, %57 : vector<192x1xi32>
    %c0_i32_35 = arith.constant 0 : i32
    %59 = vector.broadcast %c0_i32_35 : i32 to vector<192x1xi32>
    %60 = arith.cmpi slt, %56, %59 : vector<192x1xi32>
    %c0_i32_36 = arith.constant 0 : i32
    %61 = arith.cmpi slt, %54, %c0_i32_36 : i32
    %62 = vector.broadcast %61 : i1 to vector<192x1xi1>
    %63 = vector.broadcast %62 : vector<192x1xi1> to vector<192x1xi1>
    %64 = arith.xori %60, %63 : vector<192x1xi1>
    %65 = arith.andi %64, %58 : vector<192x1xi1>
    %66 = vector.broadcast %54 : i32 to vector<192x1xi32>
    %67 = arith.addi %56, %66 : vector<192x1xi32>
    %68 = arith.select %65, %67, %56 : vector<192x1xi1>, vector<192x1xi32>
    %c50_i32 = arith.constant 50 : i32
    %69 = vector.broadcast %c50_i32 : i32 to vector<192x1xi32>
    %70 = arith.cmpi slt, %68, %69 : vector<192x1xi32>
    %cst_37 = arith.constant 0.000000e+00 : f32
    %71 = vector.shape_cast %70 : vector<192x1xi1> to vector<192x1xi1>
    %72 = vector.broadcast %71 : vector<192x1xi1> to vector<192x128xi1>
    %73 = vector.broadcast %cst_37 : f32 to vector<192x128xf32>
    %74 = arith.select %72, %51, %73 : vector<192x128xi1>, vector<192x128xf32>
    %75 = arith.addf %5, %74 : vector<192x128xf32>
    %c0_38 = arith.constant 0 : index
    %c0_39 = arith.constant 0 : index
    %76 = vector.load %arg13[%c0_38, %c0_39] : memref<192x128xf32, #tpu.memory_space<vmem>>, vector<192x128xf32>
    tpu.vector_store %arg13[%c0_38, %c0_39], %75 {strides = array<i32>} : memref<192x128xf32, #tpu.memory_space<vmem>>, vector<192x128xf32>,
    return
  }
  func.func @transform_0(%arg0: i32) -> (i32, i32) {
    %c0_i32 = arith.constant 0 : i32
    %c0_i32_0 = arith.constant 0 : i32
    return %arg0, %c0_i32 : i32, i32
  }
  func.func @transform_1(%arg0: i32) -> (i32, i32) {
    %c0_i32 = arith.constant 0 : i32
    %c0_i32_0 = arith.constant 0 : i32
    return %arg0, %c0_i32 : i32, i32
  }
  func.func @transform_2(%arg0: i32) -> (i32, i32) {
    %c0_i32 = arith.constant 0 : i32
    %c0_i32_0 = arith.constant 0 : i32
    %c0_i32_1 = arith.constant 0 : i32
    return %c0_i32, %c0_i32_0 : i32, i32
  }
  func.func @transform_3(%arg0: i32) -> (i32, i32) {
    %c0_i32 = arith.constant 0 : i32
    %c0_i32_0 = arith.constant 0 : i32
    %c0_i32_1 = arith.constant 0 : i32
    return %c0_i32, %c0_i32_0 : i32, i32
  }
  func.func @transform_4(%arg0: i32) -> (i32, i32) {
    %c0_i32 = arith.constant 0 : i32
    %c0_i32_0 = arith.constant 0 : i32
    %c0_i32_1 = arith.constant 0 : i32
    return %c0_i32, %c0_i32_0 : i32, i32
  }
  func.func @transform_5(%arg0: i32) -> (i32, i32) {
    %c0_i32 = arith.constant 0 : i32
    %c0_i32_0 = arith.constant 0 : i32
    %c0_i32_1 = arith.constant 0 : i32
    return %c0_i32, %c0_i32_0 : i32, i32
  }
  func.func @transform_6(%arg0: i32) -> (i32, i32) {
    %c0_i32 = arith.constant 0 : i32
    %c0_i32_0 = arith.constant 0 : i32
    %c0_i32_1 = arith.constant 0 : i32
    return %c0_i32, %c0_i32_0 : i32, i32
  }
  func.func @transform_7(%arg0: i32) -> (i32, i32) {
    %c0_i32 = arith.constant 0 : i32
    %c0_i32_0 = arith.constant 0 : i32
    %c0_i32_1 = arith.constant 0 : i32
    return %c0_i32, %c0_i32_0 : i32, i32
  }
  func.func @transform_8(%arg0: i32) -> (i32, i32) {
    %c0_i32 = arith.constant 0 : i32
    %c0_i32_0 = arith.constant 0 : i32
    %c0_i32_1 = arith.constant 0 : i32
    return %c0_i32, %c0_i32_0 : i32, i32
  }
  func.func @transform_9(%arg0: i32) -> (i32, i32) {
    %c0_i32 = arith.constant 0 : i32
    %c0_i32_0 = arith.constant 0 : i32
    %c0_i32_1 = arith.constant 0 : i32
    return %c0_i32, %c0_i32_0 : i32, i32
  }
  func.func @transform_10(%arg0: i32) -> (i32, i32) {
    %c0_i32 = arith.constant 0 : i32
    %c0_i32_0 = arith.constant 0 : i32
    %c0_i32_1 = arith.constant 0 : i32
    return %c0_i32, %c0_i32_0 : i32, i32
  }
  func.func @transform_11(%arg0: i32) -> (i32, i32) {
    %c0_i32 = arith.constant 0 : i32
    %c0_i32_0 = arith.constant 0 : i32
    %c0_i32_1 = arith.constant 0 : i32
    return %c0_i32, %c0_i32_0 : i32, i32
  }
  func.func @transform_12(%arg0: i32) -> (i32, i32) {
    %c0_i32 = arith.constant 0 : i32
    %c0_i32_0 = arith.constant 0 : i32
    return %arg0, %c0_i32 : i32, i32
  }
}

</mosaic_0001>

<bundles_post_ra>
// kernel: video_audio_encoder_forward.1
= control target key start
LH: loop header
LB: loop body
LE: loop exit
PB: predicated region body
PF: predicated region fallthrough
CT: control target
= control target key end

     0   :  { %s3547_s0 = inlined_call_operand.vmem [shape: f32[192,48], index: 0, kind: input, shape index: {}]   ;;  %s3548_s1 = inlined_call_operand.vmem [shape: f32[192,128], index: 1, kind: input, shape index: {}]   ;;  %s3549_s2 = inlined_call_operand.vmem [shape: f32[48,128], index: 2, kind: input, shape index: {}]   ;;  %s3550_s3 = inlined_call_operand.vmem [shape: f32[1,128], index: 3, kind: input, shape index: {}]   ;;  %s3551_s4 = inlined_call_operand.vmem [shape: f32[128,128], index: 4, kind: input, shape index: {}]   ;;  %s3552_s5 = inlined_call_operand.vmem [shape: f32[1,128], index: 5, kind: input, shape index: {}]   ;;  %s3553_s6 = inlined_call_operand.vmem [shape: f32[1,128], index: 6, kind: input, shape index: {}]   ;;  %s3554_s7 = inlined_call_operand.vmem [shape: f32[1,128], index: 7, kind: input, shape index: {}]   ;;  %s3555_s8 = inlined_call_operand.vmem [shape: f32[128,128], index: 8, kind: input, shape index: {}]   ;;  %s3556_s9 = inlined_call_operand.vmem [shape: f32[1,128], index: 9, kind: input, shape index: {}]   ;;  %s3557_s10 = inlined_call_operand.vmem [shape: f32[128,128], index: 10, kind: input, shape index: {}]   ;;  %s3558_s11 = inlined_call_operand.vmem [shape: f32[1,128], index: 11, kind: input, shape index: {}]   ;;  %s3559_s12 = inlined_call_operand.hbm [shape: f32[192,128], index: 12, kind: output, shape index: {}]  }
   0x1   :  { %v361_v0 = vld [vmem:[%s3551_s4] sm:$0xff]  ;;  %v362_v1 = vld [vmem:[%s3551_s4 + $0x8] sm:$0xff]  ;;  %v363_v2 = vld [vmem:[%s3551_s4 + $0x10] sm:$0xff] }
   0x2   :  { %v2349_v3 = vpack.c.bf16 %v362_v1, %v361_v0  ;;  %v364_v4 = vld [vmem:[%s3551_s4 + $0x18] sm:$0xff]  ;;  %v365_v6 = vld [vmem:[%s3551_s4 + $0x20] sm:$0xff]  ;;  %v366_v7 = vld [vmem:[%s3551_s4 + $0x28] sm:$0xff] }
   0x3   :  { %v2353_v5 = vpack.c.bf16 %v364_v4, %v363_v2  ;;  %v2357_v8 = vpack.c.bf16 %v366_v7, %v365_v6  ;;  %v337_v9 = vld [vmem:[%s3548_s1] sm:$0xff]  ;;  %v367_v10 = vld [vmem:[%s3551_s4 + $0x30] sm:$0xff]  ;;  %v368_v11 = vld [vmem:[%s3551_s4 + $0x38] sm:$0xff] }
   0x4   :  { %2350 = vmatprep.subr.bf16.mxu1 %v2349_v3  ;;  %2165 = vmatprep.mubr.f32.mxu1 %v337_v9  ;;  %v2361_v12 = vpack.c.bf16 %v368_v11, %v367_v10  ;;  %v369_v13 = vld [vmem:[%s3551_s4 + $0x40] sm:$0xff]  ;;  %v370_v14 = vld [vmem:[%s3551_s4 + $0x48] sm:$0xff] }
   0x5   :  { %2352 = vmatpush3.bf16.msra.mxu1 %v2349_v3  ;;  %v2365_v15 = vpack.c.bf16 %v370_v14, %v369_v13 }
   0x6   :  { %2354 = vmatprep.subr.bf16.mxu1 %v2353_v5 }
   0x9   :  { %2356 = vmatpush3.bf16.msra.mxu1 %v2353_v5 }
   0xa   :  { %2358 = vmatprep.subr.bf16.mxu1 %v2357_v8 }
   0xd   :  { %2360 = vmatpush3.bf16.msra.mxu1 %v2357_v8 }
   0xe   :  { %2362 = vmatprep.subr.bf16.mxu1 %v2361_v12 }
   0xf   :  { %17 = vsyncpa [#allocation3], 0  ;;  %v371_v16 = vld [vmem:[%s3551_s4 + $0x50] sm:$0xff]  ;;  %v372_v17 = vld [vmem:[%s3551_s4 + $0x58] sm:$0xff]  ;;  %vm79_vm0 = vcmask 392192  }
  0x10   :  { %v2369_v18 = vpack.c.bf16 %v372_v17, %v371_v16  ;;  %v373_v19 = vld [vmem:[%s3551_s4 + $0x60] sm:$0xff]  ;;  %v374_v20 = vld [vmem:[%s3551_s4 + $0x68] sm:$0xff]  ;;  %v375_v22 = vld [vmem:[%s3551_s4 + $0x70] sm:$0xff] }
  0x11   :  { %2364 = vmatpush3.bf16.msra.mxu1 %v2361_v12  ;;  %v2373_v21 = vpack.c.bf16 %v374_v20, %v373_v19  ;;  %v376_v23 = vld [vmem:[%s3551_s4 + $0x78] sm:$0xff]  ;;  %v338_v25 = vld [vmem:[%s3548_s1 + $0x8] sm:$0xff]  ;;  %v339_v26 = vld [vmem:[%s3548_s1 + $0x10] sm:$0xff] }
  0x12   :  { %2366 = vmatprep.subr.bf16.mxu1 %v2365_v15  ;;  %v2377_v24 = vpack.c.bf16 %v376_v23, %v375_v22  ;;  %v340_v27 = vld [vmem:[%s3548_s1 + $0x18] sm:$0xff]  ;;  %v341_v28 = vld [vmem:[%s3548_s1 + $0x20] sm:$0xff]  ;;  %v342_v29 = vld [vmem:[%s3548_s1 + $0x28] sm:$0xff] }
  0x13   :  { %v343_v30 = vld [vmem:[%s3548_s1 + $0x30] sm:$0xff]  ;;  %v344_v31 = vld [vmem:[%s3548_s1 + $0x38] sm:$0xff]  ;;  %v345_v32 = vld [vmem:[%s3548_s1 + $0x40] sm:$0xff] }
  0x14   :  { %v346_v33 = vld [vmem:[%s3548_s1 + $0x48] sm:$0xff]  ;;  %v347_v34 = vld [vmem:[%s3548_s1 + $0x50] sm:$0xff]  ;;  %v348_v35 = vld [vmem:[%s3548_s1 + $0x58] sm:$0xff] }
  0x15   :  { %2368 = vmatpush3.bf16.msra.mxu1 %v2365_v15  ;;  %v349_v36 = vld [vmem:[%s3548_s1 + $0x60] sm:$0xff]  ;;  %v350_v37 = vld [vmem:[%s3548_s1 + $0x68] sm:$0xff]  ;;  %v351_v38 = vld [vmem:[%s3548_s1 + $0x70] sm:$0xff] }
  0x16   :  { %2370 = vmatprep.subr.bf16.mxu1 %v2369_v18  ;;  %v352_v39 = vld [vmem:[%s3548_s1 + $0x78] sm:$0xff]  ;;  %v353_v40 = vld [vmem:[%s3548_s1 + $0x80] sm:$0xff]  ;;  %v354_v41 = vld [vmem:[%s3548_s1 + $0x88] sm:$0xff] }
  0x17   :  { %v355_v42 = vld [vmem:[%s3548_s1 + $0x90] sm:$0xff]  ;;  %v356_v43 = vld [vmem:[%s3548_s1 + $0x98] sm:$0xff]  ;;  %v357_v44 = vld [vmem:[%s3548_s1 + $0xa0] sm:$0xff] }
  0x18   :  { %v358_v45 = vld [vmem:[%s3548_s1 + $0xa8] sm:$0xff]  ;;  %v359_v46 = vld [vmem:[%s3548_s1 + $0xb0] sm:$0xff]  ;;  %v360_v47 = vld [vmem:[%s3548_s1 + $0xb8] sm:$0xff] }
  0x19   :  { %2372 = vmatpush3.bf16.msra.mxu1 %v2369_v18  ;;  %v2830_v48 = vld [vmem:[%s3552_s5] ss:$0 sm:$0xff] }
  0x1a   :  { %2374 = vmatprep.subr.bf16.mxu1 %v2373_v21 }
  0x1d   :  { %2376 = vmatpush3.bf16.msra.mxu1 %v2373_v21 }
  0x1e   :  { %2378 = vmatprep.subr.bf16.mxu1 %v2377_v24 }
  0x21   :  { %2380 = vmatpush3.bf16.msra.mxu1 %v2377_v24 }
  0x24   :  { %2166 = vmatmul.mubr.f32.vlgmr.msra.gmra.mrb[0].mxu1 %v338_v25 }
  0x25   :  { %2168 = vmatprep.mubr.f32.mxu1 %v339_v26 }
  0x28   :  { %2169 = vmatmul.mubr.f32.gmra.mrb[2].mxu1 %v340_v27 }
  0x29   :  { %2171 = vmatprep.mubr.f32.mxu1 %v341_v28 }
  0x2c   :  { %2172 = vmatmul.mubr.f32.gmra.mrb[4].mxu1 %v342_v29 }
  0x2d   :  { %2174 = vmatprep.mubr.f32.mxu1 %v343_v30 }
  0x30   :  { %2175 = vmatmul.mubr.f32.gmra.mrb[6].mxu1 %v344_v31 }
  0x31   :  { %2177 = vmatprep.mubr.f32.mxu1 %v345_v32 }
  0x34   :  { %2178 = vmatmul.mubr.f32.gmra.mrb[8].mxu1 %v346_v33  ;;  %v66_v33 = vld [vmem:[%s3549_s2] sm:$0xff] }
  0x35   :  { %2180 = vmatprep.mubr.f32.mxu1 %v347_v34  ;;  %v67_v34 = vld [vmem:[%s3549_s2 + $0x8] sm:$0xff] }
  0x38   :  { %2181 = vmatmul.mubr.f32.gmra.mrb[10].mxu1 %v348_v35  ;;  %v68_v35 = vld [vmem:[%s3549_s2 + $0x10] sm:$0xff] }
  0x39   :  { %2183 = vmatprep.mubr.f32.mxu1 %v349_v36  ;;  %v2337_v36 = vpack.c.bf16 %v67_v34, %v66_v33 }
  0x3b   :  { %2338 = vmatprep.subr.bf16.mxu0 %v2337_v36 }
  0x3c   :  { %2184 = vmatmul.mubr.f32.gmra.mrb[12].mxu1 %v350_v37  ;;  %v69_v37 = vld [vmem:[%s3549_s2 + $0x18] sm:$0xff]  ;;  %2340 = vmatpush3.bf16.msra.mxu0 %v2337_v36 }
  0x3d   :  { %2186 = vmatprep.mubr.f32.mxu1 %v351_v38  ;;  %v2341_v38 = vpack.c.bf16 %v69_v37, %v68_v35 }
  0x3f   :  { %2342 = vmatprep.subr.bf16.mxu0 %v2341_v38 }
  0x40   :  { %2187 = vmatmul.mubr.f32.gmra.mrb[14].mxu1 %v352_v39  ;;  %v70_v39 = vld [vmem:[%s3549_s2 + $0x20] sm:$0xff]  ;;  %2344 = vmatpush3.bf16.msra.mxu0 %v2341_v38 }
  0x41   :  { %2189 = vmatprep.mubr.f32.mxu1 %v353_v40  ;;  %v71_v40 = vld [vmem:[%s3549_s2 + $0x28] sm:$0xff] }
  0x44   :  { %2190 = vmatmul.mubr.f32.gmra.mrb[16].mxu1 %v354_v41  ;;  %v42_v41 = vld [vmem:[%s3547_s0] sm:$0xff] }
  0x45   :  { %2192 = vmatprep.mubr.f32.mxu1 %v355_v42  ;;  %2097 = vmatprep.mubr.msk.f32.mxu0 %vm79_vm0, %v42_v41  ;;  %v2345_v42 = vpack.c.bf16 %v71_v40, %v70_v39 }
  0x47   :  { %2346 = vmatprep.subr.bf16.mxu0 %v2345_v42 }
  0x48   :  { %2193 = vmatmul.mubr.f32.gmra.mrb[18].mxu1 %v356_v43  ;;  %v571_v43 = vld [vmem:[%s3555_s8] sm:$0xff]  ;;  %2348 = vmatpush3.bf16.msra.mxu0 %v2345_v42 }
  0x49   :  { %2195 = vmatprep.mubr.f32.mxu1 %v357_v44  ;;  %v572_v44 = vld [vmem:[%s3555_s8 + $0x8] sm:$0xff] }
  0x4c   :  { %2196 = vmatmul.mubr.f32.gmra.mrb[20].mxu1 %v358_v45  ;;  %v2381_v45 = vpack.c.bf16 %v572_v44, %v571_v43 }
  0x4d   :  { %2198 = vmatprep.mubr.f32.mxu1 %v359_v46  ;;  %v573_v46 = vld [vmem:[%s3555_s8 + $0x10] sm:$0xff] }
  0x4e   :  { %2382 = vmatprep.subr.bf16.mxu0 %v2381_v45 }
  0x50   :  { %2199 = vmatmul.mubr.f32.gmra.mrb[22].mxu1 %v360_v47  ;;  %v574_v47 = vld [vmem:[%s3555_s8 + $0x18] sm:$0xff] }
  0xf7   :  { %v2167_v49 = vpop.f32.mrb[0].mxu1 }
  0xf8   :  { %v450_v50 = vpop.f32.mrb[1].mxu1  ;;  %v2837_v54 = vadd.f32 %v2167_v49, %v2830_v48  ;;  %v44_v49 = vld [vmem:[%s3547_s0 + $0x10] sm:$0xff] }
  0xf9   :  { %v2833_v51 = vadd.f32 %v2830_v48, %v450_v50  ;;  %v2385_v50 = vpack.c.bf16 %v574_v47, %v573_v46 }
  0xfb   :  { %v2170_v52 = vpop.f32.mrb[2].mxu1  ;;  %605 = vadd.xlane.f32.xlu0 %v2833_v51 }
  0xfc   :  { %v460_v53 = vpop.f32.mrb[3].mxu1  ;;  %v2845_v58 = vadd.f32 %v2170_v52, %v2830_v48  ;;  %v575_v52 = vld [vmem:[%s3555_s8 + $0x20] sm:$0xff] }
  0xfd   :  { %v2840_v55 = vadd.f32 %v2830_v48, %v460_v53  ;;  %v576_v53 = vld [vmem:[%s3555_s8 + $0x28] sm:$0xff] }
  0xff   :  { %v2173_v56 = vpop.f32.mrb[4].mxu1  ;;  %609 = vadd.xlane.f32.xlu1 %v2840_v55  ;;  %607 = vadd.xlane.f32.xlu0 %v2837_v54 }
 0x100   :  { %v470_v57 = vpop.f32.mrb[5].mxu1  ;;  %v2853_v62 = vadd.f32 %v2173_v56, %v2830_v48  ;;  %v45_v56 = vld [vmem:[%s3547_s0 + $0x18] sm:$0xff] }
 0x101   :  { %v2848_v59 = vadd.f32 %v2830_v48, %v470_v57  ;;  %v46_v57 = vld [vmem:[%s3547_s0 + $0x20] sm:$0xff] }
 0x103   :  { %v2176_v60 = vpop.f32.mrb[6].mxu1  ;;  %611 = vadd.xlane.f32.xlu1 %v2845_v58  ;;  %613 = vadd.xlane.f32.xlu0 %v2848_v59 }
 0x104   :  { %v480_v61 = vpop.f32.mrb[7].mxu1  ;;  %v2861_v2 = vadd.f32 %v2176_v60, %v2830_v48  ;;  %v2389_v60 = vpack.c.bf16 %v576_v53, %v575_v52 }
 0x105   :  { %v2856_v63 = vadd.f32 %v2830_v48, %v480_v61  ;;  %v577_v61 = vld [vmem:[%s3555_s8 + $0x30] sm:$0xff] }
 0x107   :  { %v2179_v0 = vpop.f32.mrb[8].mxu1  ;;  %615 = vadd.xlane.f32.xlu1 %v2853_v62  ;;  %617 = vadd.xlane.f32.xlu0 %v2856_v63 }
 0x108   :  { %v490_v1 = vpop.f32.mrb[9].mxu1  ;;  %v2869_v6 = vadd.f32 %v2179_v0, %v2830_v48  ;;  %v578_v0 = vld [vmem:[%s3555_s8 + $0x38] sm:$0xff] }
 0x109   :  { %v2864_v3 = vadd.f32 %v2830_v48, %v490_v1  ;;  %v47_v1 = vld [vmem:[%s3547_s0 + $0x28] sm:$0xff] }
 0x10b   :  { %v2182_v4 = vpop.f32.mrb[10].mxu1  ;;  %619 = vadd.xlane.f32.xlu1 %v2861_v2  ;;  %621 = vadd.xlane.f32.xlu0 %v2864_v3 }
 0x10c   :  { %v500_v5 = vpop.f32.mrb[11].mxu1  ;;  %v2877_v10 = vadd.f32 %v2182_v4, %v2830_v48  ;;  %v48_v4 = vld [vmem:[%s3547_s0 + $0x30] sm:$0xff] }
 0x10d   :  { %v2872_v7 = vadd.f32 %v2830_v48, %v500_v5  ;;  %v2393_v5 = vpack.c.bf16 %v578_v0, %v577_v61  ;;  %v55_v61 = vld [vmem:[%s3547_s0 + $0x68] sm:$0xff] }
 0x10f   :  { %v2185_v8 = vpop.f32.mrb[12].mxu1  ;;  %623 = vadd.xlane.f32.xlu1 %v2869_v6  ;;  %625 = vadd.xlane.f32.xlu0 %v2872_v7 }
 0x110   :  { %v510_v9 = vpop.f32.mrb[13].mxu1  ;;  %v2885_v14 = vadd.f32 %v2185_v8, %v2830_v48  ;;  %v49_v8 = vld [vmem:[%s3547_s0 + $0x38] sm:$0xff] }
 0x111   :  { %v2880_v11 = vadd.f32 %v2830_v48, %v510_v9  ;;  %v50_v9 = vld [vmem:[%s3547_s0 + $0x40] sm:$0xff] }
 0x113   :  { %v2188_v12 = vpop.f32.mrb[14].mxu1  ;;  %627 = vadd.xlane.f32.xlu1 %v2877_v10  ;;  %629 = vadd.xlane.f32.xlu0 %v2880_v11 }
 0x114   :  { %v520_v13 = vpop.f32.mrb[15].mxu1  ;;  %v2893_v18 = vadd.f32 %v2188_v12, %v2830_v48  ;;  %v51_v12 = vld [vmem:[%s3547_s0 + $0x48] sm:$0xff] }
 0x115   :  { %v2888_v15 = vadd.f32 %v2830_v48, %v520_v13  ;;  %v52_v13 = vld [vmem:[%s3547_s0 + $0x50] sm:$0xff] }
 0x117   :  { %v2191_v16 = vpop.f32.mrb[16].mxu1  ;;  %631 = vadd.xlane.f32.xlu1 %v2885_v14  ;;  %633 = vadd.xlane.f32.xlu0 %v2888_v15 }
 0x118   :  { %v530_v17 = vpop.f32.mrb[17].mxu1  ;;  %v2901_v22 = vadd.f32 %v2191_v16, %v2830_v48  ;;  %v53_v16 = vld [vmem:[%s3547_s0 + $0x58] sm:$0xff] }
 0x119   :  { %v2896_v19 = vadd.f32 %v2830_v48, %v530_v17 }
 0x11b   :  { %v2194_v20 = vpop.f32.mrb[18].mxu1  ;;  %635 = vadd.xlane.f32.xlu1 %v2893_v18  ;;  %637 = vadd.xlane.f32.xlu0 %v2896_v19 }
 0x11c   :  { %v540_v21 = vpop.f32.mrb[19].mxu1  ;;  %v2909_v26 = vadd.f32 %v2194_v20, %v2830_v48 }
 0x11d   :  { %v2904_v23 = vadd.f32 %v2830_v48, %v540_v21 }
 0x11f   :  { %v2197_v24 = vpop.f32.mrb[20].mxu1  ;;  %639 = vadd.xlane.f32.xlu1 %v2901_v22  ;;  %641 = vadd.xlane.f32.xlu0 %v2904_v23 }
 0x120   :  { %v550_v25 = vpop.f32.mrb[21].mxu1  ;;  %v2917_v30 = vadd.f32 %v2197_v24, %v2830_v48 }
 0x121   :  { %v2912_v27 = vadd.f32 %v2830_v48, %v550_v25 }
 0x123   :  { %v2200_v28 = vpop.f32.mrb[22].mxu1  ;;  %643 = vadd.xlane.f32.xlu1 %v2909_v26  ;;  %645 = vadd.xlane.f32.xlu0 %v2912_v27 }
 0x124   :  { %v560_v29 = vpop.f32.mrb[23].mxu1  ;;  %v2925_v32 = vadd.f32 %v2200_v28, %v2830_v48 }
 0x125   :  { %v2920_v31 = vadd.f32 %v2830_v48, %v560_v29  ;;  %v43_v48 = vld [vmem:[%s3547_s0 + $0x8] sm:$0xff] }
 0x126   :  { %2098 = vmatmul.mubr.msk.f32.vlgmr.msra.gmra.mrb[0].mxu0 %vm79_vm0, %v43_v48 }
 0x127   :  { %647 = vadd.xlane.f32.xlu1 %v2917_v30  ;;  %649 = vadd.xlane.f32.xlu0 %v2920_v31 }
 0x128   :  { %2384 = vmatpush3.bf16.msra.mxu0 %v2381_v45  ;;  %2100 = vmatprep.mubr.msk.f32.mxu0 %vm79_vm0, %v44_v49 }
 0x129   :  { %2386 = vmatprep.subr.bf16.mxu0 %v2385_v50 }
 0x12a   :  { %2101 = vmatmul.mubr.msk.f32.gmra.mrb[2].mxu0 %vm79_vm0, %v45_v56 }
 0x12b   :  { %651 = vadd.xlane.f32.xlu1 %v2925_v32  ;;  %2103 = vmatprep.mubr.msk.f32.mxu0 %vm79_vm0, %v46_v57 }
 0x12c   :  { %2388 = vmatpush3.bf16.msra.mxu0 %v2385_v50 }
 0x12d   :  { %2390 = vmatprep.subr.bf16.mxu0 %v2389_v60 }
 0x12e   :  { %2104 = vmatmul.mubr.msk.f32.gmra.mrb[4].mxu0 %vm79_vm0, %v47_v1 }
 0x12f   :  { %2106 = vmatprep.mubr.msk.f32.mxu0 %vm79_vm0, %v48_v4 }
 0x130   :  { %2392 = vmatpush3.bf16.msra.mxu0 %v2389_v60 }
 0x131   :  { %2394 = vmatprep.subr.bf16.mxu0 %v2393_v5 }
 0x132   :  { %2107 = vmatmul.mubr.msk.f32.gmra.mrb[6].mxu0 %vm79_vm0, %v49_v8 }
 0x133   :  { %2109 = vmatprep.mubr.msk.f32.mxu0 %vm79_vm0, %v50_v9 }
 0x134   :  { %2396 = vmatpush3.bf16.msra.mxu0 %v2393_v5 }
 0x136   :  { %2110 = vmatmul.mubr.msk.f32.gmra.mrb[8].mxu0 %vm79_vm0, %v51_v12  ;;  %v56_v12 = vld [vmem:[%s3547_s0 + $0x70] sm:$0xff] }
 0x137   :  { %2112 = vmatprep.mubr.msk.f32.mxu0 %vm79_vm0, %v52_v13 }
 0x13a   :  { %2113 = vmatmul.mubr.msk.f32.gmra.mrb[10].mxu0 %vm79_vm0, %v53_v16 }
 0x188   :  { %v606_v17 = vpop.xlane.xlu0 %605 }
 0x189   :  { %v654_v20 = vmul.f32 0.0078125, %v606_v17 }
 0x18b   :  { %v3019_v21 = vsub.f32 %v2833_v51, %v654_v20  ;;  %v580_v20 = vld [vmem:[%s3555_s8 + $0x48] sm:$0xff] }
 0x18c   :  { %v610_v24 = vpop.xlane.xlu1 %609  ;;  %v608_v25 = vpop.xlane.xlu0 %607 }
 0x18d   :  { %v656_v28 = vmul.f32 0.0078125, %v610_v24  ;;  %v655_v29 = vmul.f32 0.0078125, %v608_v25  ;;  %v702_v33 = vmul.f32 %v3019_v21, %v3019_v21  ;;  %v57_v24 = vld [vmem:[%s3547_s0 + $0x78] sm:$0xff] }
 0x18f   :  { %v3024_v34 = vsub.f32 %v2840_v55, %v656_v28  ;;  %v3027_v35 = vsub.f32 %v2837_v54, %v655_v29  ;;  %726 = vadd.xlane.f32.xlu0 %v702_v33 }
 0x190   :  { %v612_v36 = vpop.xlane.xlu1 %611  ;;  %v614_v37 = vpop.xlane.xlu0 %613 }
 0x191   :  { %v657_v38 = vmul.f32 0.0078125, %v612_v36  ;;  %v658_v39 = vmul.f32 0.0078125, %v614_v37  ;;  %v704_v51 = vmul.f32 %v3024_v34, %v3024_v34  ;;  %v703_v40 = vmul.f32 %v3027_v35, %v3027_v35  ;;  %v58_v37 = vld [vmem:[%s3547_s0 + $0x80] sm:$0xff] }
 0x193   :  { %v3034_v41 = vsub.f32 %v2845_v58, %v657_v38  ;;  %v3037_v55 = vsub.f32 %v2848_v59, %v658_v39  ;;  %730 = vadd.xlane.f32.xlu0 %v704_v51  ;;  %728 = vadd.xlane.f32.xlu1 %v703_v40 }
 0x194   :  { %v616_v54 = vpop.xlane.xlu1 %615  ;;  %v618_v42 = vpop.xlane.xlu0 %617 }
 0x195   :  { %v659_v43 = vmul.f32 0.0078125, %v616_v54  ;;  %v660_v44 = vmul.f32 0.0078125, %v618_v42  ;;  %v705_v45 = vmul.f32 %v3034_v41, %v3034_v41  ;;  %v706_v46 = vmul.f32 %v3037_v55, %v3037_v55 }
 0x197   :  { %v3044_v47 = vsub.f32 %v2853_v62, %v659_v43  ;;  %v3047_v58 = vsub.f32 %v2856_v63, %v660_v44  ;;  %732 = vadd.xlane.f32.xlu1 %v705_v45  ;;  %734 = vadd.xlane.f32.xlu0 %v706_v46  ;;  %v54_v63 = vld [vmem:[%s3547_s0 + $0x60] sm:$0xff]  ;;  %v581_v44 = vld [vmem:[%s3555_s8 + $0x50] sm:$0xff]  ;;  %v582_v45 = vld [vmem:[%s3555_s8 + $0x58] sm:$0xff] }
 0x198   :  { %v620_v59 = vpop.xlane.xlu1 %619  ;;  %v622_v48 = vpop.xlane.xlu0 %621  ;;  %2115 = vmatprep.mubr.msk.f32.mxu0 %vm79_vm0, %v54_v63 }
 0x199   :  { %v661_v49 = vmul.f32 0.0078125, %v620_v59  ;;  %v662_v50 = vmul.f32 0.0078125, %v622_v48  ;;  %v707_v52 = vmul.f32 %v3044_v47, %v3044_v47  ;;  %v708_v53 = vmul.f32 %v3047_v58, %v3047_v58  ;;  %2116 = vmatmul.mubr.msk.f32.gmra.mrb[12].mxu0 %vm79_vm0, %v55_v61  ;;  %v584_v61 = vld [vmem:[%s3555_s8 + $0x68] sm:$0xff] }
 0x19a   :  { %2118 = vmatprep.mubr.msk.f32.mxu0 %vm79_vm0, %v56_v12 }
 0x19b   :  { %v3054_v56 = vsub.f32 %v2861_v2, %v661_v49  ;;  %v3057_v62 = vsub.f32 %v2864_v3, %v662_v50  ;;  %736 = vadd.xlane.f32.xlu1 %v707_v52  ;;  %738 = vadd.xlane.f32.xlu0 %v708_v53  ;;  %v61_v49 = vld [vmem:[%s3547_s0 + $0x98] sm:$0xff]  ;;  %v2401_v50 = vpack.c.bf16 %v582_v45, %v581_v44 }
 0x19c   :  { %v624_v57 = vpop.xlane.xlu1 %623  ;;  %v626_v60 = vpop.xlane.xlu0 %625 }
 0x19d   :  { %v663_v0 = vmul.f32 0.0078125, %v624_v57  ;;  %v664_v2 = vmul.f32 0.0078125, %v626_v60  ;;  %v709_v3 = vmul.f32 %v3054_v56, %v3054_v56  ;;  %v710_v1 = vmul.f32 %v3057_v62, %v3057_v62  ;;  %2119 = vmatmul.mubr.msk.f32.gmra.mrb[14].mxu0 %vm79_vm0, %v57_v24  ;;  %v583_v60 = vld [vmem:[%s3555_s8 + $0x60] sm:$0xff] }
 0x19e   :  { %2121 = vmatprep.mubr.msk.f32.mxu0 %vm79_vm0, %v58_v37 }
 0x19f   :  { %v3072_v4 = vsub.f32 %v2869_v6, %v663_v0  ;;  %v3075_v5 = vsub.f32 %v2872_v7, %v664_v2  ;;  %740 = vadd.xlane.f32.xlu1 %v709_v3  ;;  %742 = vadd.xlane.f32.xlu0 %v710_v1  ;;  %v579_v7 = vld [vmem:[%s3555_s8 + $0x40] sm:$0xff]  ;;  %v63_v1 = vld [vmem:[%s3547_s0 + $0xa8] sm:$0xff] }
 0x1a0   :  { %v628_v8 = vpop.xlane.xlu1 %627  ;;  %v630_v9 = vpop.xlane.xlu0 %629  ;;  %v2397_v25 = vpack.c.bf16 %v580_v20, %v579_v7 }
 0x1a1   :  { %v665_v13 = vmul.f32 0.0078125, %v628_v8  ;;  %v666_v16 = vmul.f32 0.0078125, %v630_v9  ;;  %v711_v17 = vmul.f32 %v3072_v4, %v3072_v4  ;;  %v712_v6 = vmul.f32 %v3075_v5, %v3075_v5 }
 0x1a2   :  { %2398 = vmatprep.subr.bf16.mxu0 %v2397_v25  ;;  %v2405_v8 = vpack.c.bf16 %v584_v61, %v583_v60 }
 0x1a3   :  { %v3096_v28 = vsub.f32 %v2877_v10, %v665_v13  ;;  %v3099_v29 = vsub.f32 %v2880_v11, %v666_v16  ;;  %744 = vadd.xlane.f32.xlu1 %v711_v17  ;;  %746 = vadd.xlane.f32.xlu0 %v712_v6  ;;  %v59_v11 = vld [vmem:[%s3547_s0 + $0x88] sm:$0xff]  ;;  %v585_v17 = vld [vmem:[%s3555_s8 + $0x70] sm:$0xff]  ;;  %v586_v6 = vld [vmem:[%s3555_s8 + $0x78] sm:$0xff] }
 0x1a4   :  { %v632_v33 = vpop.xlane.xlu1 %631  ;;  %v634_v36 = vpop.xlane.xlu0 %633  ;;  %2400 = vmatpush3.bf16.msra.mxu0 %v2397_v25  ;;  %v65_v25 = vld [vmem:[%s3547_s0 + $0xb8] sm:$0xff] }
 0x1a5   :  { %v667_v38 = vmul.f32 0.0078125, %v632_v33  ;;  %v668_v39 = vmul.f32 0.0078125, %v634_v36  ;;  %v713_v51 = vmul.f32 %v3096_v28, %v3096_v28  ;;  %v714_v10 = vmul.f32 %v3099_v29, %v3099_v29  ;;  %2122 = vmatmul.mubr.msk.f32.gmra.mrb[16].mxu0 %vm79_vm0, %v59_v11  ;;  %2402 = vmatprep.subr.bf16.mxu0 %v2401_v50 }
 0x1a6   :  { %v2409_v33 = vpack.c.bf16 %v586_v6, %v585_v17 }
 0x1a7   :  { %v3114_v40 = vsub.f32 %v2885_v14, %v667_v38  ;;  %v3117_v54 = vsub.f32 %v2888_v15, %v668_v39  ;;  %748 = vadd.xlane.f32.xlu1 %v713_v51  ;;  %750 = vadd.xlane.f32.xlu0 %v714_v10  ;;  %v60_v14 = vld [vmem:[%s3547_s0 + $0x90] sm:$0xff] }
 0x1a8   :  { %v636_v42 = vpop.xlane.xlu1 %635  ;;  %v638_v43 = vpop.xlane.xlu0 %637  ;;  %2124 = vmatprep.mubr.msk.f32.mxu0 %vm79_vm0, %v60_v14  ;;  %2404 = vmatpush3.bf16.msra.mxu0 %v2401_v50  ;;  %v592_v50 = vld [vmem:[%s3557_s10 + $0x20] sm:$0xff] }
 0x1a9   :  { %v669_v46 = vmul.f32 0.0078125, %v636_v42  ;;  %v670_v59 = vmul.f32 0.0078125, %v638_v43  ;;  %v715_v15 = vmul.f32 %v3114_v40, %v3114_v40  ;;  %v716_v48 = vmul.f32 %v3117_v54, %v3117_v54  ;;  %2125 = vmatmul.mubr.msk.f32.gmra.mrb[18].mxu0 %vm79_vm0, %v61_v49  ;;  %2406 = vmatprep.subr.bf16.mxu0 %v2405_v8 }
 0x1ab   :  { %v3138_v52 = vsub.f32 %v2893_v18, %v669_v46  ;;  %v3141_v53 = vsub.f32 %v2896_v19, %v670_v59  ;;  %752 = vadd.xlane.f32.xlu1 %v715_v15  ;;  %754 = vadd.xlane.f32.xlu0 %v716_v48  ;;  %v62_v18 = vld [vmem:[%s3547_s0 + $0xa0] sm:$0xff]  ;;  %v589_v59 = vld [vmem:[%s3557_s10 + $0x8] sm:$0xff]  ;;  %v591_v48 = vld [vmem:[%s3557_s10 + $0x18] sm:$0xff] }
 0x1ac   :  { %v640_v63 = vpop.xlane.xlu1 %639  ;;  %v642_v57 = vpop.xlane.xlu0 %641  ;;  %2127 = vmatprep.mubr.msk.f32.mxu0 %vm79_vm0, %v62_v18  ;;  %2408 = vmatpush3.bf16.msra.mxu0 %v2405_v8 }
 0x1ad   :  { %v671_v0 = vmul.f32 0.0078125, %v640_v63  ;;  %v672_v19 = vmul.f32 0.0078125, %v642_v57  ;;  %v717_v2 = vmul.f32 %v3138_v52, %v3138_v52  ;;  %v718_v3 = vmul.f32 %v3141_v53, %v3141_v53  ;;  %2128 = vmatmul.mubr.msk.f32.gmra.mrb[20].mxu0 %vm79_vm0, %v63_v1  ;;  %2410 = vmatprep.subr.bf16.mxu0 %v2409_v33  ;;  %v593_v63 = vld [vmem:[%s3557_s10 + $0x28] sm:$0xff] }
 0x1ae   :  { %v3237_v57 = vpack.c.bf16 %v593_v63, %v592_v50 }
 0x1af   :  { %v3162_v9 = vsub.f32 %v2901_v22, %v671_v0  ;;  %v3165_v12 = vsub.f32 %v2904_v23, %v672_v19  ;;  %756 = vadd.xlane.f32.xlu1 %v717_v2  ;;  %758 = vadd.xlane.f32.xlu0 %v718_v3  ;;  %v64_v22 = vld [vmem:[%s3547_s0 + $0xb0] sm:$0xff] }
 0x1b0   :  { %v644_v13 = vpop.xlane.xlu1 %643  ;;  %v646_v16 = vpop.xlane.xlu0 %645  ;;  %2130 = vmatprep.mubr.msk.f32.mxu0 %vm79_vm0, %v64_v22  ;;  %2412 = vmatpush3.bf16.msra.mxu0 %v2409_v33  ;;  %v3244_v33 = vld [vmem:[%s3553_s6] ss:$0 sm:$0xff] }
 0x1b1   :  { %v673_v7 = vmul.f32 0.0078125, %v644_v13  ;;  %v674_v23 = vmul.f32 0.0078125, %v646_v16  ;;  %v719_v20 = vmul.f32 %v3162_v9, %v3162_v9  ;;  %v720_v24 = vmul.f32 %v3165_v12, %v3165_v12  ;;  %2131 = vmatmul.mubr.msk.f32.gmra.mrb[22].mxu0 %vm79_vm0, %v65_v25 }
 0x1b3   :  { %v3186_v36 = vsub.f32 %v2909_v26, %v673_v7  ;;  %v3189_v37 = vsub.f32 %v2912_v27, %v674_v23  ;;  %760 = vadd.xlane.f32.xlu1 %v719_v20  ;;  %762 = vadd.xlane.f32.xlu0 %v720_v24 }
 0x1b4   :  { %v648_v38 = vpop.xlane.xlu1 %647  ;;  %v650_v39 = vpop.xlane.xlu0 %649 }
 0x1b5   :  { %v675_v51 = vmul.f32 0.0078125, %v648_v38  ;;  %v676_v10 = vmul.f32 0.0078125, %v650_v39  ;;  %v721_v11 = vmul.f32 %v3186_v36, %v3186_v36  ;;  %v722_v42 = vmul.f32 %v3189_v37, %v3189_v37 }
 0x1b7   :  { %v3196_v26 = vsub.f32 %v2917_v30, %v675_v51  ;;  %v3199_v27 = vsub.f32 %v2920_v31, %v676_v10  ;;  %764 = vadd.xlane.f32.xlu1 %v721_v11  ;;  %766 = vadd.xlane.f32.xlu0 %v722_v42  ;;  %v588_v31 = vld [vmem:[%s3557_s10] sm:$0xff] }
 0x1b8   :  { %v652_v43 = vpop.xlane.xlu1 %651  ;;  %v3216_v15 = vpack.c.bf16 %v589_v59, %v588_v31  ;;  %v3249_v10 = vld [vmem:[%s3550_s3] ss:$0 sm:$0xff] }
 0x1b9   :  { %v677_v44 = vmul.f32 0.0078125, %v652_v43  ;;  %v723_v45 = vmul.f32 %v3196_v26, %v3196_v26  ;;  %v724_v14 = vmul.f32 %v3199_v27, %v3199_v27 }
 0x1ba   :  { %2445 = vmatprep.subr.bf16.mxu1 %v3216_v15  ;;  %2414 = vmatprep.subr.bf16.mxu0 %v3216_v15 }
 0x1bb   :  { %v3206_v46 = vsub.f32 %v2925_v32, %v677_v44  ;;  %768 = vadd.xlane.f32.xlu1 %v723_v45  ;;  %770 = vadd.xlane.f32.xlu0 %v724_v14  ;;  %v590_v32 = vld [vmem:[%s3557_s10 + $0x10] sm:$0xff]  ;;  %v3255_v14 = vld [vmem:[%s3554_s7] ss:$0 sm:$0xff] }
 0x1bc   :  { %2453 = vmatpush3.bf16.msra.mxu1 %v3216_v15  ;;  %v3227_v49 = vpack.c.bf16 %v591_v48, %v590_v32 }
 0x1bd   :  { %v725_v30 = vmul.f32 %v3206_v46, %v3206_v46 }
 0x1be   :  { %2446 = vmatprep.subr.bf16.mxu1 %v3227_v49 }
 0x1bf   :  { %772 = vadd.xlane.f32.xlu1 %v725_v30 }
 0x1c0   :  { %2454 = vmatpush3.bf16.msra.mxu1 %v3227_v49 }
 0x1c1   :  { %2447 = vmatprep.subr.bf16.mxu1 %v3237_v57 }
 0x1c4   :  { %2455 = vmatpush3.bf16.msra.mxu1 %v3237_v57 }
 0x205   :  { %v2108_v30 = vpop.f32.mrb[6].mxu0 }
 0x206   :  { %v254_v59 = vadd.f32 %v2108_v30, %v3249_v10  ;;  %v3259_v32 = vpop.f32.mrb[7].mxu0 }
 0x208   :  { %1872 = vst [vmem:[#allocation2 + $0x38] sm:$0xff] %v254_v59 }
 0x21c   :  { %v727_v60 = vpop.xlane.xlu0 %726 }
 0x21d   :  { %v774_v61 = vmul.f32 0.0078125, %v727_v60 }
 0x21f   :  { %v798_v18 = vadd.f32 1e-05, %v774_v61 }
 0x220   :  { %v729_v0 = vpop.xlane.xlu1 %728  ;;  %v731_v19 = vpop.xlane.xlu0 %730 }
 0x221   :  { %2518 = vrsqrt.f32 %v798_v18  ;;  %v775_v2 = vmul.f32 0.0078125, %v729_v0  ;;  %v776_v3 = vmul.f32 0.0078125, %v731_v19 }
 0x223   :  { %v799_v1 = vadd.f32 1e-05, %v775_v2  ;;  %v800_v8 = vadd.f32 1e-05, %v776_v3 }
 0x224   :  { %v733_v13 = vpop.xlane.xlu1 %732  ;;  %v735_v16 = vpop.xlane.xlu0 %734 }
 0x225   :  { %2520 = vrsqrt.f32 %v799_v1  ;;  %v777_v17 = vmul.f32 0.0078125, %v733_v13  ;;  %v778_v6 = vmul.f32 0.0078125, %v735_v16  ;;  %v3264_v1 = vpop.f32.mrb[8].mxu0 }
 0x226   :  { %2522 = vrsqrt.f32 %v800_v8  ;;  %v3267_v13 = vpop.f32.mrb[9].mxu0 }
 0x227   :  { %v801_v22 = vadd.f32 1e-05, %v777_v17  ;;  %v802_v7 = vadd.f32 1e-05, %v778_v6 }
 0x228   :  { %v737_v23 = vpop.xlane.xlu1 %736  ;;  %v739_v20 = vpop.xlane.xlu0 %738 }
 0x229   :  { %2524 = vrsqrt.f32 %v801_v22  ;;  %v779_v24 = vmul.f32 0.0078125, %v737_v23  ;;  %v780_v25 = vmul.f32 0.0078125, %v739_v20 }
 0x22a   :  { %2526 = vrsqrt.f32 %v802_v7 }
 0x22b   :  { %v2519_v38 = vpop.eup %2518  ;;  %v803_v39 = vadd.f32 1e-05, %v779_v24  ;;  %v804_v51 = vadd.f32 1e-05, %v780_v25 }
 0x22c   :  { %v741_v11 = vpop.xlane.xlu1 %740  ;;  %v743_v42 = vpop.xlane.xlu0 %742  ;;  %v846_v43 = vmul.f32 %v2519_v38, %v3019_v21 }
 0x22d   :  { %2528 = vrsqrt.f32 %v803_v39  ;;  %v781_v44 = vmul.f32 0.0078125, %v741_v11  ;;  %v782_v45 = vmul.f32 0.0078125, %v743_v42  ;;  %v3273_v39 = vpop.f32.mrb[10].mxu0 }
 0x22e   :  { %2530 = vrsqrt.f32 %v804_v51  ;;  %v876_v31 = vmul.f32 %v3244_v33, %v846_v43  ;;  %v3277_v42 = vpop.f32.mrb[11].mxu0 }
 0x22f   :  { %v2521_v48 = vpop.eup %2520  ;;  %v805_v50 = vadd.f32 1e-05, %v781_v44  ;;  %v806_v63 = vadd.f32 1e-05, %v782_v45 }
 0x230   :  { %v2523_v21 = vpop.eup %2522  ;;  %v847_v60 = vmul.f32 %v2521_v48, %v3027_v35  ;;  %v745_v61 = vpop.xlane.xlu1 %744  ;;  %v906_v0 = vadd.f32 %v3255_v14, %v876_v31 }
 0x231   :  { %v747_v18 = vpop.xlane.xlu0 %746  ;;  %2532 = vrsqrt.f32 %v805_v50  ;;  %v783_v19 = vmul.f32 0.0078125, %v745_v61  ;;  %v848_v3 = vmul.f32 %v2523_v21, %v3024_v34 }
 0x232   :  { %v784_v2 = vmul.f32 0.0078125, %v747_v18  ;;  %2534 = vrsqrt.f32 %v806_v63  ;;  %2233 = vmatprep.mubr.f32.mxu0 %v906_v0  ;;  %v877_v8 = vmul.f32 %v3244_v33, %v847_v60 }
 0x233   :  { %v2525_v16 = vpop.eup %2524  ;;  %v807_v35 = vadd.f32 1e-05, %v783_v19  ;;  %v878_v6 = vmul.f32 %v3244_v33, %v848_v3 }
 0x234   :  { %v808_v17 = vadd.f32 1e-05, %v784_v2  ;;  %v2527_v22 = vpop.eup %2526  ;;  %v749_v7 = vpop.xlane.xlu1 %748  ;;  %v907_v20 = vadd.f32 %v3255_v14, %v877_v8  ;;  %v849_v34 = vmul.f32 %v2525_v16, %v3034_v41 }
 0x235   :  { %v751_v23 = vpop.xlane.xlu0 %750  ;;  %2536 = vrsqrt.f32 %v807_v35  ;;  %v785_v24 = vmul.f32 0.0078125, %v749_v7  ;;  %v908_v38 = vadd.f32 %v3255_v14, %v878_v6  ;;  %v850_v11 = vmul.f32 %v2527_v22, %v3037_v55 }
 0x236   :  { %v786_v25 = vmul.f32 0.0078125, %v751_v23  ;;  %2538 = vrsqrt.f32 %v808_v17  ;;  %2234 = vmatmul.mubr.f32.vlgmr.msra.gmra.mrb[24].mxu0 %v907_v20  ;;  %v879_v51 = vmul.f32 %v3244_v33, %v849_v34 }
 0x237   :  { %v2529_v43 = vpop.eup %2528  ;;  %v809_v44 = vadd.f32 1e-05, %v785_v24  ;;  %2236 = vmatprep.mubr.f32.mxu0 %v908_v38  ;;  %2416 = vmatpush3.bf16.msra.mxu0 %v3216_v15  ;;  %v880_v48 = vmul.f32 %v3244_v33, %v850_v11 }
 0x238   :  { %v810_v45 = vadd.f32 1e-05, %v786_v25  ;;  %v2531_v41 = vpop.eup %2530  ;;  %v753_v30 = vpop.xlane.xlu1 %752  ;;  %v909_v59 = vadd.f32 %v3255_v14, %v879_v51  ;;  %v851_v50 = vmul.f32 %v2529_v43, %v3044_v47  ;;  %2418 = vmatprep.subr.bf16.mxu0 %v3227_v49 }
 0x239   :  { %v755_v31 = vpop.xlane.xlu0 %754  ;;  %2540 = vrsqrt.f32 %v809_v44  ;;  %v787_v55 = vmul.f32 0.0078125, %v753_v30  ;;  %v852_v21 = vmul.f32 %v2531_v41, %v3047_v58  ;;  %v910_v15 = vadd.f32 %v3255_v14, %v880_v48 }
 0x23a   :  { %v788_v63 = vmul.f32 0.0078125, %v755_v31  ;;  %2542 = vrsqrt.f32 %v810_v45  ;;  %2237 = vmatmul.mubr.f32.gmra.mrb[26].mxu0 %v909_v59  ;;  %v881_v60 = vmul.f32 %v3244_v33, %v851_v50 }
 0x23b   :  { %v2533_v61 = vpop.eup %2532  ;;  %v811_v18 = vadd.f32 1e-05, %v787_v55  ;;  %v882_v19 = vmul.f32 %v3244_v33, %v852_v21  ;;  %2420 = vmatpush3.bf16.msra.mxu0 %v3227_v49  ;;  %2239 = vmatprep.mubr.f32.mxu0 %v910_v15 }
 0x23c   :  { %v812_v0 = vadd.f32 1e-05, %v788_v63  ;;  %v2535_v47 = vpop.eup %2534  ;;  %v757_v2 = vpop.xlane.xlu1 %756  ;;  %v911_v8 = vadd.f32 %v3255_v14, %v881_v60  ;;  %v853_v58 = vmul.f32 %v2533_v61, %v3054_v56  ;;  %2422 = vmatprep.subr.bf16.mxu0 %v3237_v57 }
 0x23d   :  { %v759_v3 = vpop.xlane.xlu0 %758  ;;  %2544 = vrsqrt.f32 %v811_v18  ;;  %v789_v16 = vmul.f32 0.0078125, %v757_v2  ;;  %v912_v17 = vadd.f32 %v3255_v14, %v882_v19  ;;  %v854_v49 = vmul.f32 %v2535_v47, %v3057_v62 }
 0x23e   :  { %v790_v35 = vmul.f32 0.0078125, %v759_v3  ;;  %2546 = vrsqrt.f32 %v812_v0  ;;  %2240 = vmatmul.mubr.f32.gmra.mrb[28].mxu0 %v911_v8  ;;  %v883_v6 = vmul.f32 %v3244_v33, %v853_v58 }
 0x23f   :  { %v2537_v22 = vpop.eup %2536  ;;  %v813_v7 = vadd.f32 1e-05, %v789_v16  ;;  %2242 = vmatprep.mubr.f32.mxu0 %v912_v17  ;;  %2424 = vmatpush3.bf16.msra.mxu0 %v3237_v57  ;;  %v884_v25 = vmul.f32 %v3244_v33, %v854_v49 }
 0x240   :  { %v814_v23 = vadd.f32 1e-05, %v790_v35  ;;  %v2539_v56 = vpop.eup %2538  ;;  %v761_v20 = vpop.xlane.xlu1 %760  ;;  %v913_v24 = vadd.f32 %v3255_v14, %v883_v6  ;;  %v855_v38 = vmul.f32 %v2537_v22, %v3072_v4 }
 0x241   :  { %v763_v34 = vpop.xlane.xlu0 %762  ;;  %2548 = vrsqrt.f32 %v813_v7  ;;  %v791_v51 = vmul.f32 0.0078125, %v761_v20  ;;  %v856_v62 = vmul.f32 %v2539_v56, %v3075_v5  ;;  %v914_v43 = vadd.f32 %v3255_v14, %v884_v25 }
 0x242   :  { %v792_v11 = vmul.f32 0.0078125, %v763_v34  ;;  %2550 = vrsqrt.f32 %v814_v23  ;;  %2243 = vmatmul.mubr.f32.gmra.mrb[30].mxu0 %v913_v24  ;;  %v885_v57 = vmul.f32 %v3244_v33, %v855_v38 }
 0x243   :  { %v2541_v44 = vpop.eup %2540  ;;  %v815_v45 = vadd.f32 1e-05, %v791_v51  ;;  %v886_v30 = vmul.f32 %v3244_v33, %v856_v62  ;;  %2245 = vmatprep.mubr.f32.mxu0 %v914_v43 }
 0x244   :  { %v816_v41 = vadd.f32 1e-05, %v792_v11  ;;  %v2543_v31 = vpop.eup %2542  ;;  %v765_v59 = vpop.xlane.xlu1 %764  ;;  %v915_v48 = vadd.f32 %v3255_v14, %v885_v57  ;;  %v857_v50 = vmul.f32 %v2541_v44, %v3096_v28 }
 0x245   :  { %v767_v4 = vpop.xlane.xlu0 %766  ;;  %2552 = vrsqrt.f32 %v815_v45  ;;  %v793_v5 = vmul.f32 0.0078125, %v765_v59  ;;  %v916_v63 = vadd.f32 %v3255_v14, %v886_v30  ;;  %v858_v15 = vmul.f32 %v2543_v31, %v3099_v29 }
 0x246   :  { %v794_v55 = vmul.f32 0.0078125, %v767_v4  ;;  %2554 = vrsqrt.f32 %v816_v41  ;;  %2246 = vmatmul.mubr.f32.gmra.mrb[32].mxu0 %v915_v48  ;;  %v887_v21 = vmul.f32 %v3244_v33, %v857_v50 }
 0x247   :  { %v2545_v60 = vpop.eup %2544  ;;  %v817_v61 = vadd.f32 1e-05, %v793_v5  ;;  %2248 = vmatprep.mubr.f32.mxu0 %v916_v63  ;;  %v888_v2 = vmul.f32 %v3244_v33, %v858_v15 }
 0x248   :  { %v818_v18 = vadd.f32 1e-05, %v794_v55  ;;  %v2547_v0 = vpop.eup %2546  ;;  %v769_v19 = vpop.xlane.xlu1 %768  ;;  %v917_v28 = vadd.f32 %v3255_v14, %v887_v21  ;;  %v859_v3 = vmul.f32 %v2545_v60, %v3114_v40 }
 0x249   :  { %v771_v47 = vpop.xlane.xlu0 %770  ;;  %2556 = vrsqrt.f32 %v817_v61  ;;  %v795_v8 = vmul.f32 0.0078125, %v769_v19  ;;  %v860_v16 = vmul.f32 %v2547_v0, %v3117_v54  ;;  %v918_v29 = vadd.f32 %v3255_v14, %v888_v2 }
 0x24a   :  { %v796_v58 = vmul.f32 0.0078125, %v771_v47  ;;  %2558 = vrsqrt.f32 %v818_v18  ;;  %2249 = vmatmul.mubr.f32.gmra.mrb[34].mxu0 %v917_v28  ;;  %v889_v35 = vmul.f32 %v3244_v33, %v859_v3 }
 0x24b   :  { %v2549_v17 = vpop.eup %2548  ;;  %v819_v6 = vadd.f32 1e-05, %v795_v8  ;;  %v890_v22 = vmul.f32 %v3244_v33, %v860_v16  ;;  %2251 = vmatprep.mubr.f32.mxu0 %v918_v29 }
 0x24c   :  { %v820_v49 = vadd.f32 1e-05, %v796_v58  ;;  %v2551_v7 = vpop.eup %2550  ;;  %v773_v23 = vpop.xlane.xlu1 %772  ;;  %v919_v40 = vadd.f32 %v3255_v14, %v889_v35  ;;  %v861_v56 = vmul.f32 %v2549_v17, %v3138_v52  ;;  %v594_v17 = vld [vmem:[%s3557_s10 + $0x30] sm:$0xff] }
 0x24d   :  { %2560 = vrsqrt.f32 %v819_v6  ;;  %v797_v54 = vmul.f32 0.0078125, %v773_v23  ;;  %v920_v20 = vadd.f32 %v3255_v14, %v890_v22  ;;  %v862_v34 = vmul.f32 %v2551_v7, %v3141_v53  ;;  %v595_v6 = vld [vmem:[%s3557_s10 + $0x38] sm:$0xff]  ;;  %v596_v22 = vld [vmem:[%s3557_s10 + $0x40] sm:$0xff]  ;;  %v597_v7 = vld [vmem:[%s3557_s10 + $0x48] sm:$0xff] }
 0x24e   :  { %2562 = vrsqrt.f32 %v820_v49  ;;  %2252 = vmatmul.mubr.f32.gmra.mrb[36].mxu0 %v919_v40  ;;  %v891_v24 = vmul.f32 %v3244_v33, %v861_v56  ;;  %v2425_v49 = vpack.c.bf16 %v595_v6, %v594_v17  ;;  %v2429_v23 = vpack.c.bf16 %v597_v7, %v596_v22  ;;  %v598_v40 = vld [vmem:[%s3557_s10 + $0x50] sm:$0xff]  ;;  %v599_v56 = vld [vmem:[%s3557_s10 + $0x58] sm:$0xff] }
 0x24f   :  { %v2553_v25 = vpop.eup %2552  ;;  %v821_v38 = vadd.f32 1e-05, %v797_v54  ;;  %2254 = vmatprep.mubr.f32.mxu0 %v920_v20  ;;  %v892_v51 = vmul.f32 %v3244_v33, %v862_v34  ;;  %v2433_v54 = vpack.c.bf16 %v599_v56, %v598_v40  ;;  %v600_v20 = vld [vmem:[%s3557_s10 + $0x60] sm:$0xff]  ;;  %v601_v34 = vld [vmem:[%s3557_s10 + $0x68] sm:$0xff] }
 0x250   :  { %v2555_v11 = vpop.eup %2554  ;;  %v921_v62 = vadd.f32 %v3255_v14, %v891_v24  ;;  %v863_v52 = vmul.f32 %v2553_v25, %v3162_v9  ;;  %2426 = vmatprep.subr.bf16.mxu0 %v2425_v49  ;;  %2448 = vmatprep.subr.bf16.mxu1 %v2425_v49  ;;  %v2437_v24 = vpack.c.bf16 %v601_v34, %v600_v20  ;;  %v602_v25 = vld [vmem:[%s3557_s10 + $0x70] sm:$0xff] }
 0x251   :  { %2564 = vrsqrt.f32 %v821_v38  ;;  %v922_v43 = vadd.f32 %v3255_v14, %v892_v51  ;;  %v864_v57 = vmul.f32 %v2555_v11, %v3165_v12  ;;  %2428 = vmatpush3.bf16.msra.mxu0 %v2425_v49  ;;  %2456 = vmatpush3.bf16.msra.mxu1 %v2425_v49  ;;  %v603_v38 = vld [vmem:[%s3557_s10 + $0x78] sm:$0xff]  ;;  %v3399_v11 = vld [vmem:[%s3556_s9] ss:$0 sm:$0xff] }
 0x252   :  { %2255 = vmatmul.mubr.f32.gmra.mrb[38].mxu0 %v921_v62  ;;  %v893_v53 = vmul.f32 %v3244_v33, %v863_v52  ;;  %2430 = vmatprep.subr.bf16.mxu0 %v2429_v23  ;;  %v2441_v51 = vpack.c.bf16 %v603_v38, %v602_v25 }
 0x253   :  { %v2557_v44 = vpop.eup %2556  ;;  %2257 = vmatprep.mubr.f32.mxu0 %v922_v43  ;;  %v894_v45 = vmul.f32 %v3244_v33, %v864_v57  ;;  %2449 = vmatprep.subr.bf16.mxu1 %v2429_v23 }
 0x254   :  { %v2559_v41 = vpop.eup %2558  ;;  %v923_v30 = vadd.f32 %v3255_v14, %v893_v53  ;;  %v865_v31 = vmul.f32 %v2557_v44, %v3186_v36 }
 0x255   :  { %v924_v59 = vadd.f32 %v3255_v14, %v894_v45  ;;  %v866_v9 = vmul.f32 %v2559_v41, %v3189_v37  ;;  %2432 = vmatpush3.bf16.msra.mxu0 %v2429_v23  ;;  %2457 = vmatpush3.bf16.msra.mxu1 %v2429_v23 }
 0x256   :  { %2258 = vmatmul.mubr.f32.gmra.mrb[40].mxu0 %v923_v30  ;;  %v895_v4 = vmul.f32 %v3244_v33, %v865_v31  ;;  %2434 = vmatprep.subr.bf16.mxu0 %v2433_v54 }
 0x257   :  { %v2561_v12 = vpop.eup %2560  ;;  %2260 = vmatprep.mubr.f32.mxu0 %v924_v59  ;;  %v896_v48 = vmul.f32 %v3244_v33, %v866_v9  ;;  %2450 = vmatprep.subr.bf16.mxu1 %v2433_v54 }
 0x258   :  { %v2563_v50 = vpop.eup %2562  ;;  %v925_v5 = vadd.f32 %v3255_v14, %v895_v4  ;;  %v867_v55 = vmul.f32 %v2561_v12, %v3196_v26 }
 0x259   :  { %v926_v63 = vadd.f32 %v3255_v14, %v896_v48  ;;  %v868_v36 = vmul.f32 %v2563_v50, %v3199_v27  ;;  %2436 = vmatpush3.bf16.msra.mxu0 %v2433_v54  ;;  %2458 = vmatpush3.bf16.msra.mxu1 %v2433_v54 }
 0x25a   :  { %2261 = vmatmul.mubr.f32.gmra.mrb[42].mxu0 %v925_v5  ;;  %v897_v21 = vmul.f32 %v3244_v33, %v867_v55  ;;  %2438 = vmatprep.subr.bf16.mxu0 %v2437_v24 }
 0x25b   :  { %v2565_v37 = vpop.eup %2564  ;;  %2263 = vmatprep.mubr.f32.mxu0 %v926_v63  ;;  %v898_v15 = vmul.f32 %v3244_v33, %v868_v36  ;;  %2451 = vmatprep.subr.bf16.mxu1 %v2437_v24 }
 0x25c   :  { %v927_v60 = vadd.f32 %v3255_v14, %v897_v21  ;;  %v869_v61 = vmul.f32 %v2565_v37, %v3206_v46 }
 0x25d   :  { %v928_v18 = vadd.f32 %v3255_v14, %v898_v15  ;;  %2440 = vmatpush3.bf16.msra.mxu0 %v2437_v24  ;;  %2459 = vmatpush3.bf16.msra.mxu1 %v2437_v24 }
 0x25e   :  { %2264 = vmatmul.mubr.f32.gmra.mrb[44].mxu0 %v927_v60  ;;  %v899_v26 = vmul.f32 %v3244_v33, %v869_v61  ;;  %2442 = vmatprep.subr.bf16.mxu0 %v2441_v51 }
 0x25f   :  { %2266 = vmatprep.mubr.f32.mxu0 %v928_v18  ;;  %2452 = vmatprep.subr.bf16.mxu1 %v2441_v51 }
 0x260   :  { %v929_v0 = vadd.f32 %v3255_v14, %v899_v26 }
 0x261   :  { %2444 = vmatpush3.bf16.msra.mxu0 %v2441_v51  ;;  %2460 = vmatpush3.bf16.msra.mxu1 %v2441_v51 }
 0x262   :  { %2267 = vmatmul.mubr.f32.gmra.mrb[46].mxu0 %v929_v0 }
 0x26c   :  { %v3344_v27 = vpop.f32.mrb[12].mxu0 }
 0x26d   :  { %v3346_v19 = vpop.f32.mrb[13].mxu0 }
 0x270   :  { %v2120_v47 = vpop.f32.mrb[14].mxu0 }
 0x271   :  { %v294_v28 = vadd.f32 %v2120_v47, %v3249_v10  ;;  %v3349_v2 = vpop.f32.mrb[15].mxu0 }
 0x273   :  { %1880 = vst [vmem:[#allocation2 + $0x78] sm:$0xff] %v294_v28 }
 0x278   :  { %v3351_v46 = vpop.f32.mrb[16].mxu0 }
 0x279   :  { %v3353_v3 = vpop.f32.mrb[17].mxu0 }
 0x27c   :  { %v3355_v8 = vpop.f32.mrb[18].mxu0 }
 0x27d   :  { %v3357_v33 = vpop.f32.mrb[19].mxu0 }
 0x280   :  { %v3359_v14 = vpop.f32.mrb[20].mxu0 }
 0x281   :  { %v3361_v58 = vpop.f32.mrb[21].mxu0 }
 0x284   :  { %v2132_v16 = vpop.f32.mrb[22].mxu0 }
 0x285   :  { %v334_v29 = vadd.f32 %v2132_v16, %v3249_v10  ;;  %v3364_v35 = vpop.f32.mrb[23].mxu0 }
 0x287   :  { %1888 = vst [vmem:[#allocation2 + $0xb8] sm:$0xff] %v334_v29 }
 0x309   :  { %v2235_v62 = vpop.f32.mrb[24].mxu0 }
 0x30a   :  { %v1008_v52 = vadd.f32 %v2235_v62, %v3399_v11  ;;  %v1002_v43 = vpop.f32.mrb[25].mxu0 }
 0x30b   :  { %v1003_v57 = vadd.f32 %v3399_v11, %v1002_v43 }
 0x30c   :  { %v1146_v53 = vmul.f32 0.70710677, %v1008_v52  ;;  %v1122_v17 = vmul.f32 0.5, %v1008_v52 }
 0x30d   :  { %v1145_v44 = vmul.f32 0.70710677, %v1003_v57  ;;  %v2238_v45 = vpop.f32.mrb[26].mxu0  ;;  %v1121_v47 = vmul.f32 0.5, %v1003_v57 }
 0x30e   :  { %2566 = verf.f32 %v1146_v53  ;;  %v1018_v41 = vadd.f32 %v2238_v45, %v3399_v11  ;;  %v1012_v30 = vpop.f32.mrb[27].mxu0 }
 0x30f   :  { %2568 = verf.f32 %v1145_v44  ;;  %v1013_v31 = vadd.f32 %v3399_v11, %v1012_v30 }
 0x310   :  { %v1148_v59 = vmul.f32 0.70710677, %v1018_v41  ;;  %v1124_v51 = vmul.f32 0.5, %v1018_v41 }
 0x311   :  { %v1147_v9 = vmul.f32 0.70710677, %v1013_v31  ;;  %v2241_v4 = vpop.f32.mrb[28].mxu0  ;;  %v1123_v34 = vmul.f32 0.5, %v1013_v31 }
 0x312   :  { %2570 = verf.f32 %v1148_v59  ;;  %v1028_v12 = vadd.f32 %v2241_v4, %v3399_v11  ;;  %v1022_v48 = vpop.f32.mrb[29].mxu0 }
 0x313   :  { %2572 = verf.f32 %v1147_v9  ;;  %v1023_v50 = vadd.f32 %v3399_v11, %v1022_v48 }
 0x314   :  { %v1150_v5 = vmul.f32 0.70710677, %v1028_v12  ;;  %v1126_v48 = vmul.f32 0.5, %v1028_v12 }
 0x315   :  { %v1149_v55 = vmul.f32 0.70710677, %v1023_v50  ;;  %v2244_v63 = vpop.f32.mrb[30].mxu0  ;;  %v1125_v59 = vmul.f32 0.5, %v1023_v50 }
 0x316   :  { %2574 = verf.f32 %v1150_v5  ;;  %v3408_v36 = vadd.f32 %v2244_v63, %v3399_v11  ;;  %v1032_v21 = vpop.f32.mrb[31].mxu0 }
 0x317   :  { %2576 = verf.f32 %v1149_v55  ;;  %v1033_v37 = vadd.f32 %v3399_v11, %v1032_v21 }
 0x318   :  { %v2567_v15 = vpop.eup %2566  ;;  %v1152_v60 = vmul.f32 0.70710677, %v3408_v36 }
 0x319   :  { %v2569_v61 = vpop.eup %2568  ;;  %v1194_v18 = vadd.f32 1.0, %v2567_v15  ;;  %v1151_v26 = vmul.f32 0.70710677, %v1033_v37  ;;  %v2247_v0 = vpop.f32.mrb[32].mxu0 }
 0x31a   :  { %v1193_v28 = vadd.f32 1.0, %v2569_v61  ;;  %2578 = verf.f32 %v1152_v60  ;;  %v3413_v16 = vadd.f32 %v2247_v0, %v3399_v11  ;;  %v1042_v29 = vpop.f32.mrb[33].mxu0 }
 0x31b   :  { %2580 = verf.f32 %v1151_v26  ;;  %v1043_v6 = vadd.f32 %v3399_v11, %v1042_v29  ;;  %v1218_v40 = vmul.f32 %v1194_v18, %v1122_v17  ;;  %v1127_v26 = vmul.f32 0.5, %v1033_v37 }
 0x31c   :  { %v2571_v49 = vpop.eup %2570  ;;  %v1154_v22 = vmul.f32 0.70710677, %v3413_v16  ;;  %v1217_v7 = vmul.f32 %v1193_v28, %v1121_v47  ;;  %v1128_v28 = vmul.f32 0.5, %v3408_v36 }
 0x31d   :  { %v2573_v23 = vpop.eup %2572  ;;  %v1196_v56 = vadd.f32 1.0, %v2571_v49  ;;  %v1153_v54 = vmul.f32 0.70710677, %v1043_v6  ;;  %v2250_v20 = vpop.f32.mrb[34].mxu0 }
 0x31e   :  { %v1195_v24 = vadd.f32 1.0, %v2573_v23  ;;  %2582 = verf.f32 %v1154_v22  ;;  %v3418_v25 = vadd.f32 %v2250_v20, %v3399_v11  ;;  %v1052_v38 = vpop.f32.mrb[35].mxu0  ;;  %2301 = vmatprep.mubr.f32.mxu0 %v1217_v7 }
 0x31f   :  { %2584 = verf.f32 %v1153_v54  ;;  %v3421_v62 = vadd.f32 %v3399_v11, %v1052_v38  ;;  %2302 = vmatmul.mubr.f32.vlgmr.msra.gmra.mrb[0].mxu0 %v1218_v40  ;;  %v1220_v31 = vmul.f32 %v1196_v56, %v1124_v51  ;;  %v1129_v54 = vmul.f32 0.5, %v1043_v6 }
 0x320   :  { %v2575_v52 = vpop.eup %2574  ;;  %v1156_v43 = vmul.f32 0.70710677, %v3418_v25  ;;  %v1219_v57 = vmul.f32 %v1195_v24, %v1123_v34  ;;  %v1130_v24 = vmul.f32 0.5, %v3413_v16 }
 0x321   :  { %v2577_v53 = vpop.eup %2576  ;;  %v1198_v44 = vadd.f32 1.0, %v2575_v52  ;;  %v1155_v45 = vmul.f32 0.70710677, %v3421_v62  ;;  %v2253_v30 = vpop.f32.mrb[36].mxu0 }
 0x322   :  { %v1197_v9 = vadd.f32 1.0, %v2577_v53  ;;  %2586 = verf.f32 %v1156_v43  ;;  %v3426_v41 = vadd.f32 %v2253_v30, %v3399_v11  ;;  %v1062_v4 = vpop.f32.mrb[37].mxu0  ;;  %2304 = vmatprep.mubr.f32.mxu0 %v1219_v57  ;;  %v1131_v30 = vmul.f32 0.5, %v3421_v62 }
 0x323   :  { %2588 = verf.f32 %v1155_v45  ;;  %v3429_v5 = vadd.f32 %v3399_v11, %v1062_v4  ;;  %2305 = vmatmul.mubr.f32.gmra.mrb[2].mxu0 %v1220_v31  ;;  %v1222_v18 = vmul.f32 %v1198_v44, %v1126_v48 }
 0x324   :  { %v2579_v55 = vpop.eup %2578  ;;  %v1158_v63 = vmul.f32 0.70710677, %v3426_v41  ;;  %v1221_v21 = vmul.f32 %v1197_v9, %v1125_v59  ;;  %v1132_v9 = vmul.f32 0.5, %v3418_v25 }
 0x325   :  { %v2581_v15 = vpop.eup %2580  ;;  %v1200_v60 = vadd.f32 1.0, %v2579_v55  ;;  %v1157_v50 = vmul.f32 0.70710677, %v3429_v5  ;;  %v2256_v61 = vpop.f32.mrb[38].mxu0 }
 0x326   :  { %v1199_v0 = vadd.f32 1.0, %v2581_v15  ;;  %2590 = verf.f32 %v1158_v63  ;;  %v3434_v12 = vadd.f32 %v2256_v61, %v3399_v11  ;;  %v1072_v47 = vpop.f32.mrb[39].mxu0  ;;  %2307 = vmatprep.mubr.f32.mxu0 %v1221_v21  ;;  %v1133_v61 = vmul.f32 0.5, %v3429_v5 }
 0x327   :  { %2592 = verf.f32 %v1157_v50  ;;  %v3438_v29 = vadd.f32 %v3399_v11, %v1072_v47  ;;  %2308 = vmatmul.mubr.f32.gmra.mrb[4].mxu0 %v1222_v18  ;;  %v1224_v37 = vmul.f32 %v1200_v60, %v1128_v28 }
 0x328   :  { %v2583_v17 = vpop.eup %2582  ;;  %v1160_v49 = vmul.f32 0.70710677, %v3434_v12  ;;  %v1223_v22 = vmul.f32 %v1199_v0, %v1127_v26  ;;  %v1134_v0 = vmul.f32 0.5, %v3426_v41  ;;  %v1136_v41 = vmul.f32 0.5, %v3434_v12 }
 0x329   :  { %v2585_v7 = vpop.eup %2584  ;;  %v1202_v23 = vadd.f32 1.0, %v2583_v17  ;;  %v1159_v40 = vmul.f32 0.70710677, %v3438_v29  ;;  %v2259_v56 = vpop.f32.mrb[40].mxu0 }
 0x32a   :  { %v1201_v20 = vadd.f32 1.0, %v2585_v7  ;;  %2594 = verf.f32 %v1160_v49  ;;  %v3443_v36 = vadd.f32 %v2259_v56, %v3399_v11  ;;  %v1082_v34 = vpop.f32.mrb[41].mxu0  ;;  %2310 = vmatprep.mubr.f32.mxu1 %v1223_v22 }
 0x32b   :  { %2596 = verf.f32 %v1159_v40  ;;  %v3447_v38 = vadd.f32 %v3399_v11, %v1082_v34  ;;  %2311 = vmatmul.mubr.f32.vlgmr.msra.gmra.mrb[24].mxu1 %v1224_v37  ;;  %v1226_v45 = vmul.f32 %v1202_v23, %v1130_v24  ;;  %v1135_v40 = vmul.f32 0.5, %v3438_v29 }
 0x32c   :  { %v2587_v51 = vpop.eup %2586  ;;  %v1162_v52 = vmul.f32 0.70710677, %v3443_v36  ;;  %v1225_v43 = vmul.f32 %v1201_v20, %v1129_v54 }
 0x32d   :  { %v2589_v57 = vpop.eup %2588  ;;  %v1204_v6 = vadd.f32 1.0, %v2587_v51  ;;  %v1161_v53 = vmul.f32 0.70710677, %v3447_v38  ;;  %v2262_v44 = vpop.f32.mrb[42].mxu0  ;;  %v1137_v29 = vmul.f32 0.5, %v3447_v38 }
 0x32e   :  { %v1203_v31 = vadd.f32 1.0, %v2589_v57  ;;  %2598 = verf.f32 %v1162_v52  ;;  %v3453_v16 = vadd.f32 %v2262_v44, %v3399_v11  ;;  %v1092_v59 = vpop.f32.mrb[43].mxu0  ;;  %2313 = vmatprep.mubr.f32.mxu1 %v1225_v43 }
 0x32f   :  { %2600 = verf.f32 %v1161_v53  ;;  %v1093_v4 = vadd.f32 %v3399_v11, %v1092_v59  ;;  %2314 = vmatmul.mubr.f32.gmra.mrb[26].mxu1 %v1226_v45  ;;  %v1228_v50 = vmul.f32 %v1204_v6, %v1132_v9  ;;  %v1138_v45 = vmul.f32 0.5, %v3443_v36 }
 0x330   :  { %v2591_v48 = vpop.eup %2590  ;;  %v1164_v55 = vmul.f32 0.70710677, %v3453_v16  ;;  %v1227_v63 = vmul.f32 %v1203_v31, %v1131_v30 }
 0x331   :  { %v2593_v21 = vpop.eup %2592  ;;  %v1206_v15 = vadd.f32 1.0, %v2591_v48  ;;  %v1163_v62 = vmul.f32 0.70710677, %v1093_v4  ;;  %v2265_v60 = vpop.f32.mrb[44].mxu0  ;;  %v1139_v9 = vmul.f32 0.5, %v1093_v4 }
 0x332   :  { %v1205_v18 = vadd.f32 1.0, %v2593_v21  ;;  %2602 = verf.f32 %v1164_v55  ;;  %v1108_v26 = vadd.f32 %v2265_v60, %v3399_v11  ;;  %v1102_v25 = vpop.f32.mrb[45].mxu0  ;;  %2316 = vmatprep.mubr.f32.mxu1 %v1227_v63  ;;  %v1140_v55 = vmul.f32 0.5, %v3453_v16 }
 0x333   :  { %2604 = verf.f32 %v1163_v62  ;;  %v1103_v47 = vadd.f32 %v3399_v11, %v1102_v25  ;;  %2317 = vmatmul.mubr.f32.gmra.mrb[28].mxu1 %v1228_v50  ;;  %v1230_v5 = vmul.f32 %v1206_v15, %v1134_v0 }
 0x334   :  { %v2595_v28 = vpop.eup %2594  ;;  %v1166_v17 = vmul.f32 0.70710677, %v1108_v26  ;;  %v1229_v49 = vmul.f32 %v1205_v18, %v1133_v61  ;;  %v1142_v50 = vmul.f32 0.5, %v1108_v26  ;;  %v3472_v26 = vld [vmem:[%s3558_s11] ss:$0 sm:$0xff] }
 0x335   :  { %v2597_v22 = vpop.eup %2596  ;;  %v1208_v7 = vadd.f32 1.0, %v2595_v28  ;;  %v1165_v37 = vmul.f32 0.70710677, %v1103_v47  ;;  %v2268_v23 = vpop.f32.mrb[46].mxu0  ;;  %v1141_v60 = vmul.f32 0.5, %v1103_v47 }
 0x336   :  { %v1207_v56 = vadd.f32 1.0, %v2597_v22  ;;  %2606 = verf.f32 %v1166_v17  ;;  %v1118_v54 = vadd.f32 %v2268_v23, %v3399_v11  ;;  %v1112_v20 = vpop.f32.mrb[47].mxu0  ;;  %2319 = vmatprep.mubr.f32.mxu1 %v1229_v49 }
 0x337   :  { %2608 = verf.f32 %v1165_v37  ;;  %v1113_v34 = vadd.f32 %v3399_v11, %v1112_v20  ;;  %2320 = vmatmul.mubr.f32.gmra.mrb[30].mxu1 %v1230_v5  ;;  %v1232_v53 = vmul.f32 %v1208_v7, %v1136_v41  ;;  %v1432_v7 = vlaneseq }
 0x338   :  { %v2599_v24 = vpop.eup %2598  ;;  %v1168_v51 = vmul.f32 0.70710677, %v1118_v54  ;;  %v1231_v52 = vmul.f32 %v1207_v56, %v1135_v40  ;;  %v1144_v16 = vmul.f32 0.5, %v1118_v54  ;;  %v2467_v5 = vadd.f32 %v3472_v26, %v3249_v10 }
 0x339   :  { %v2601_v43 = vpop.eup %2600  ;;  %v1210_v57 = vadd.f32 1.0, %v2599_v24  ;;  %v1167_v6 = vmul.f32 0.70710677, %v1113_v34  ;;  %v1143_v28 = vmul.f32 0.5, %v1113_v34  ;;  %v3477_v40 = vshrl.u32 %v1432_v7, 7 }
 0x33a   :  { %v1209_v44 = vadd.f32 1.0, %v2601_v43  ;;  %2610 = verf.f32 %v1168_v51  ;;  %2322 = vmatprep.mubr.f32.mxu1 %v1231_v52 }
 0x33b   :  { %2612 = verf.f32 %v1167_v6  ;;  %2323 = vmatmul.mubr.f32.gmra.mrb[32].mxu1 %v1232_v53  ;;  %v1234_v59 = vmul.f32 %v1210_v57, %v1138_v45  ;;  %v1439_v51 = vadd.s32 48, %v3477_v40  ;;  %v259_v45 = vadd.f32 %v3249_v10, %v3267_v13 }
 0x33c   :  { %v2603_v12 = vpop.eup %2602  ;;  %v1233_v30 = vmul.f32 %v1209_v44, %v1137_v29  ;;  %v264_v44 = vadd.f32 %v3264_v1, %v3249_v10  ;;  %v269_v1 = vadd.f32 %v3249_v10, %v3277_v42 }
 0x33d   :  { %v2605_v11 = vpop.eup %2604  ;;  %v1212_v31 = vadd.f32 1.0, %v2603_v12  ;;  %v1503_v53 = vand.u32 63, %v1439_v51  ;;  %v2477_v13 = vadd.f32 %v3472_v26, %v259_v45 }
 0x33e   :  { %v1211_v48 = vadd.f32 1.0, %v2605_v11  ;;  %2325 = vmatprep.mubr.f32.mxu1 %v1233_v30 }
 0x33f   :  { %2326 = vmatmul.mubr.f32.gmra.mrb[34].mxu1 %v1234_v59  ;;  %v1236_v62 = vmul.f32 %v1212_v31, %v1140_v55  ;;  %vm1751_vm1 = vcmp.lt.s32.totalorder %v1503_v53, 50  ;;  %v249_v31 = vadd.f32 %v3249_v10, %v3259_v32  ;;  %v274_v59 = vadd.f32 %v3273_v39, %v3249_v10  ;;  %v3499_v32 = vld [vmem:[%s3550_s3] ss:$0 sm:$0xff]  ;;  %s2639_s3 = smov [#allocation2]  }
 0x340   :  { %v2607_v63 = vpop.eup %2606  ;;  %v1235_v38 = vmul.f32 %v1211_v48, %v1139_v9  ;;  %v2474_v9 = vadd.f32 %v3472_v26, %v264_v44  ;;  %v284_v39 = vadd.f32 %v3499_v32, %v3344_v27  ;;  %v279_v42 = vadd.f32 %v3499_v32, %v3346_v19  ;;  %s1894_s4 = sshll.u32 %s2639_s3, 4  ;;  %s1895_s4 = int_to_ptr.vmem [resolvable:$true] %s1894_s4 }
 0x341   :  { %v2609_v21 = vpop.eup %2608  ;;  %v1214_v15 = vadd.f32 1.0, %v2607_v63  ;;  %v324_v51 = vadd.f32 %v3499_v32, %v3359_v14  ;;  %s2615_s2 = scalar_lea.vmem %s1895_s4, 3072  ;;  %p2620_p1 = scmp.lt.s32.totalorder %s1895_s4, %s1895_s4 }
 0x342   :  { %v1213_v36 = vadd.f32 1.0, %v2609_v21  ;;  %2328 = vmatprep.mubr.f32.mxu1 %v1235_v38  ;;  %p2616_p0 = scmp.ne.s32.totalorder %s1895_s4, %s2615_s2  ;;  %p2621_p2 = scmp.lt.s32.totalorder %s2615_s2, %s2615_s2 }
 0x343   :  { %2329 = vmatmul.mubr.f32.gmra.mrb[36].mxu1 %v1236_v62  ;;  %v1238_v4 = vmul.f32 %v1214_v15, %v1142_v50 }
 0x344   :  { %v2611_v61 = vpop.eup %2610  ;;  %v1237_v18 = vmul.f32 %v1213_v36, %v1141_v60  ;;  %v2483_v60 = vadd.f32 %v3472_v26, %v269_v1  ;;  %p2622_p3 = por %p2621_p2, %p2620_p1 }
 0x345   :  { %v2613_v25 = vpop.eup %2612  ;;  %v1216_v0 = vadd.f32 1.0, %v2611_v61  ;;  %v1447_v61 = vadd.s32 112, %v3477_v40 }
 0x346   :  { %v1215_v17 = vadd.f32 1.0, %v2613_v25  ;;  %2331 = vmatprep.mubr.f32.mxu1 %v1237_v18  ;;  %v2486_v25 = vadd.f32 %v3472_v26, %v284_v39  ;;  %p2623_p4 = pnand %p2622_p3, %p2616_p0 }
 0x347   :  { %2332 = vmatmul.mubr.f32.gmra.mrb[38].mxu1 %v1238_v4  ;;  %v1240_v22 = vmul.f32 %v1216_v0, %v1144_v16  ;;  %v2489_v0 = vadd.f32 %v3472_v26, %v279_v42  ;;  %v304_v16 = vadd.f32 %v3499_v32, %v3351_v46  ;;  %v309_v46 = vadd.f32 %v3499_v32, %v3357_v33 }
 0x348   :  { %v1239_v49 = vmul.f32 %v1215_v17, %v1143_v28  ;;  %v1559_v17 = vand.u32 63, %v1447_v61 }
 0x34a   :  { %2334 = vmatprep.mubr.f32.mxu1 %v1239_v49  ;;  %v299_v49 = vadd.f32 %v3499_v32, %v3353_v3  ;;  %vm1759_vm2 = vcmp.lt.s32.totalorder %v1559_v17, 50 }
 0x34b   :  { %2335 = vmatmul.mubr.f32.gmra.mrb[40].mxu1 %v1240_v22 }
 0x34c   :  { %v2495_v3 = vadd.f32 %v3472_v26, %v299_v49 }
 0x3f2   :  { %v2303_v47 = vpop.f32.mrb[0].mxu0 }
 0x3f3   :  { %v2461_v37 = vadd.f32 %v2303_v47, %v3249_v10  ;;  %v1313_v23 = vpop.f32.mrb[1].mxu0 }
 0x3f4   :  { %v2463_v56 = vadd.f32 %v3249_v10, %v1313_v23  ;;  %v2480_v10 = vadd.f32 %v3472_v26, %v274_v59  ;;  %v314_v23 = vadd.f32 %v3499_v32, %v3355_v8  ;;  %v319_v8 = vadd.f32 %v3499_v32, %v3361_v58 }
 0x3f5   :  { %v2462_v54 = vadd.f32 %v2461_v37, %v3472_v26  ;;  %v289_v37 = vadd.f32 %v3499_v32, %v3349_v2 }
 0x3f6   :  { %v2464_v20 = vadd.f32 %v2463_v56, %v3472_v26  ;;  %v2306_v41 = vpop.f32.mrb[2].mxu0  ;;  %v2498_v2 = vadd.f32 %v3472_v26, %v314_v23  ;;  %v2507_v44 = vadd.f32 %v3472_v26, %v319_v8 }
 0x3f7   :  { %1866 = vst [vmem:[#allocation2 + $0x8] sm:$0xff] %v2462_v54  ;;  %v2466_v34 = vadd.f32 %v2467_v5, %v2306_v41  ;;  %v1323_v24 = vpop.f32.mrb[3].mxu0 }
 0x3f8   :  { %1865 = vst [vmem:[#allocation2] sm:$0xff] %v2464_v20  ;;  %v2468_v52 = vadd.f32 %v2467_v5, %v1323_v24 }
 0x3f9   :  { %1868 = vst [vmem:[#allocation2 + $0x18] sm:$0xff] %v2466_v34 }
 0x3fa   :  { %1867 = vst [vmem:[#allocation2 + $0x10] sm:$0xff] %v2468_v52  ;;  %v2309_v43 = vpop.f32.mrb[4].mxu0  ;;  %v2501_v52 = vadd.f32 %v3472_v26, %v309_v46 }
 0x3fb   :  { %v2470_v57 = vadd.f32 %v2467_v5, %v2309_v43  ;;  %v1333_v6 = vpop.f32.mrb[5].mxu0 }
 0x3fc   :  { %v2472_v29 = vadd.f32 %v2467_v5, %v1333_v6  ;;  %v2492_v5 = vadd.f32 %v3472_v26, %v304_v16  ;;  %v1455_v6 = vadd.s32 176, %v3477_v40  ;;  %v329_v40 = vadd.f32 %v3499_v32, %v3364_v35 }
 0x3fd   :  { %1870 = vst [vmem:[#allocation2 + $0x28] sm:$0xff] %v2470_v57 }
 0x3fe   :  { %1869 = vst [vmem:[#allocation2 + $0x20] sm:$0xff] %v2472_v29  ;;  %v2312_v12 = vpop.f32.mrb[24].mxu1  ;;  %v2504_v29 = vadd.f32 %v3472_v26, %v324_v51 }
 0x3ff   :  { %v1343_v30 = vpop.f32.mrb[25].mxu1 }
 0x400   :  { %v1344_v11 = vadd.f32 %v3472_v26, %v1343_v30  ;;  %v1615_v30 = vand.u32 63, %v1455_v6 }
 0x402   :  { %v1823_v48 = vsel %vm1751_vm1, %v1344_v11, 0.0  ;;  %v2315_v55 = vpop.f32.mrb[26].mxu1  ;;  %vm1767_vm3 = vcmp.lt.s32.totalorder %v1615_v30, 50 }
 0x403   :  { %v1847_v63 = vadd.f32 %v1823_v48, %v249_v31  ;;  %v2475_v38 = vadd.f32 %v2474_v9, %v2315_v55  ;;  %v1353_v21 = vpop.f32.mrb[27].mxu1 }
 0x404   :  { %v2478_v15 = vadd.f32 %v2477_v13, %v1353_v21 }
 0x405   :  { %1871 = vst [vmem:[#allocation2 + $0x30] sm:$0xff] %v1847_v63  ;;  %1874 = vst [vmem:[#allocation2 + $0x48] sm:$0xff] %v2475_v38 }
 0x406   :  { %1873 = vst [vmem:[#allocation2 + $0x40] sm:$0xff] %v2478_v15  ;;  %v2318_v62 = vpop.f32.mrb[28].mxu1 }
 0x407   :  { %v2481_v36 = vadd.f32 %v2480_v10, %v2318_v62  ;;  %v1363_v50 = vpop.f32.mrb[29].mxu1 }
 0x408   :  { %v2484_v18 = vadd.f32 %v2483_v60, %v1363_v50 }
 0x409   :  { %1876 = vst [vmem:[#allocation2 + $0x58] sm:$0xff] %v2481_v36 }
 0x40a   :  { %1875 = vst [vmem:[#allocation2 + $0x50] sm:$0xff] %v2484_v18  ;;  %v2321_v27 = vpop.f32.mrb[30].mxu1 }
 0x40b   :  { %v2487_v4 = vadd.f32 %v2486_v25, %v2321_v27  ;;  %v1373_v28 = vpop.f32.mrb[31].mxu1 }
 0x40c   :  { %v2490_v19 = vadd.f32 %v2489_v0, %v1373_v28 }
 0x40d   :  { %1878 = vst [vmem:[#allocation2 + $0x68] sm:$0xff] %v2487_v4 }
 0x40e   :  { %1877 = vst [vmem:[#allocation2 + $0x60] sm:$0xff] %v2490_v19  ;;  %v2324_v22 = vpop.f32.mrb[32].mxu1 }
 0x40f   :  { %v1383_v7 = vpop.f32.mrb[33].mxu1 }
 0x410   :  { %v1384_v47 = vadd.f32 %v3472_v26, %v1383_v7 }
 0x412   :  { %v1831_v56 = vsel %vm1759_vm2, %v1384_v47, 0.0  ;;  %v2327_v54 = vpop.f32.mrb[34].mxu1 }
 0x413   :  { %v1855_v20 = vadd.f32 %v1831_v56, %v289_v37  ;;  %v2493_v41 = vadd.f32 %v2492_v5, %v2327_v54  ;;  %v1393_v34 = vpop.f32.mrb[35].mxu1 }
 0x414   :  { %v2496_v24 = vadd.f32 %v2495_v3, %v1393_v34 }
 0x415   :  { %1879 = vst [vmem:[#allocation2 + $0x70] sm:$0xff] %v1855_v20  ;;  %1882 = vst [vmem:[#allocation2 + $0x88] sm:$0xff] %v2493_v41 }
 0x416   :  { %1881 = vst [vmem:[#allocation2 + $0x80] sm:$0xff] %v2496_v24  ;;  %v2330_v33 = vpop.f32.mrb[36].mxu1 }
 0x417   :  { %v2499_v43 = vadd.f32 %v2498_v2, %v2330_v33  ;;  %v1403_v57 = vpop.f32.mrb[37].mxu1 }
 0x418   :  { %v2502_v53 = vadd.f32 %v2501_v52, %v1403_v57 }
 0x419   :  { %1884 = vst [vmem:[#allocation2 + $0x98] sm:$0xff] %v2499_v43 }
 0x41a   :  { %1883 = vst [vmem:[#allocation2 + $0x90] sm:$0xff] %v2502_v53  ;;  %v2333_v14 = vpop.f32.mrb[38].mxu1 }
 0x41b   :  { %v2505_v45 = vadd.f32 %v2504_v29, %v2333_v14  ;;  %v1413_v12 = vpop.f32.mrb[39].mxu1 }
 0x41c   :  { %v2508_v58 = vadd.f32 %v2507_v44, %v1413_v12 }
 0x41d   :  { %1886 = vst [vmem:[#allocation2 + $0xa8] sm:$0xff] %v2505_v45 }
 0x41e   :  { %1885 = vst [vmem:[#allocation2 + $0xa0] sm:$0xff] %v2508_v58  ;;  %v2336_v11 = vpop.f32.mrb[40].mxu1 }
 0x41f   :  { %v1423_v31 = vpop.f32.mrb[41].mxu1 }
 0x420   :  { %v1424_v59 = vadd.f32 %v3472_v26, %v1423_v31 }
 0x422   :  { %v1839_v9 = vsel %vm1767_vm3, %v1424_v59, 0.0 }
 0x423   :  { %v1863_v1 = vadd.f32 %v1839_v9, %v329_v40 }
 0x425   :  { %1887 = vst [vmem:[#allocation2 + $0xb0] sm:$0xff] %v1863_v1 }
 0x426   :  { %2626 = shalt.err (!%p2623_p4)
}
 0x427   :  { %s2627_s7 = scalar_lea.hbm %s3559_s12, 3072 }
 0x428   :  { %p2628_p5 = scmp.ne.s32.totalorder %s3559_s12, %s2627_s7  ;;  %p2631_p6 = scmp.lt.u32.totalorder %s2627_s7, %s3559_s12 }
 0x42a   :  { %p2633_p7 = pnand %p2631_p6, %p2628_p5 }
 0x42c   :  { %2636 = shalt.err (!%p2633_p7)
}
 0x42d   :  { %s2640_s28 = smov 128   ;;  %s2641_s29 = smov 8  }
 0x42e   :  { %1900 = dma.vmem_to_hbm [thread:$0]  %s1895_s4, 3072, %s3559_s12, [#allocation3], %s2640_s28, %s2640_s28, %s2641_s29  }
 0x42f   :  { %2637 = dma.done.wait [#allocation3], 3072  }
 0x430   :  { %2638 = vsyncadd [#allocation3], 4294964224 }
 0x431   :  { %1904 = vsyncpa [#allocation3], 1 }

</bundles_post_ra>
